<compile_context>
chip_gen: v7x
topology: tpu7x:2x2x1
jax: 0.10.0
libtpu: 0.0.40
codegen_flags: <defaults>
</compile_context>

<pallas_src>
import jax
import jax.numpy as jnp
from jax.experimental import pallas as pl
from jax.experimental.pallas import tpu as pltpu


# --------------------------------------------------------------------------- #
# Kernel: serial LSTM recurrence over time chunks                              #
# --------------------------------------------------------------------------- #
def _lstm_recurrence_kernel(gx_ref, wh_ref, hlast_ref, h_sc, c_sc):
    """One grid step == T_BLOCK timesteps of the recurrence for one batch block.

    gx_ref    : (T_BLOCK, B_blk, 4*Hp) f32   precomputed x-projection + bias
    wh_ref    : (Hp, 4*Hp)             bf16  hidden->gates weight (transposed, padded)
    hlast_ref : (B_blk, Hp)            f32   final hidden state (written at last chunk)
    h_sc,c_sc : (B_blk, Hp)            f32   recurrent state, persists across chunks
    """
    tc = pl.program_id(1)
    Hp = h_sc.shape[1]
    t_block = gx_ref.shape[0]

    @pl.when(tc == 0)
    def _():
        h_sc[...] = jnp.zeros_like(h_sc)
        c_sc[...] = jnp.zeros_like(c_sc)

    # Loaded once per chunk; constant index_map -> DMA'd once for the whole grid.
    # NOTE: pl.Buffered(1) / weight-stationary MXU driving (matmul_push_rhs) are
    # further levers when H scales to 2-4K; irrelevant at this size.
    wh = wh_ref[...]                                          # (Hp, 4Hp) bf16

    def step(t, carry):
        h, c = carry
        # Single serial MXU call per timestep (x-projection already folded in).
        gates = gx_ref[t] + jnp.dot(h.astype(wh.dtype), wh,
                                    preferred_element_type=jnp.float32)
        # Gate blocks are Hp-wide -> slices land on 128-lane boundaries.
        i_g = jax.nn.sigmoid(gates[:, 0 * Hp:1 * Hp])
        f_g = jax.nn.sigmoid(gates[:, 1 * Hp:2 * Hp])
        g_g = jnp.tanh(gates[:, 2 * Hp:3 * Hp])
        o_g = jax.nn.sigmoid(gates[:, 3 * Hp:4 * Hp])
        c_new = f_g * c + i_g * g_g
        h_new = o_g * jnp.tanh(c_new)
        return h_new, c_new

    h_f, c_f = jax.lax.fori_loop(0, t_block, step, (h_sc[...], c_sc[...]),
                                 unroll=True)
    h_sc[...] = h_f
    c_sc[...] = c_f

    @pl.when(tc == pl.num_programs(1) - 1)
    def _():
        hlast_ref[...] = h_f


# --------------------------------------------------------------------------- #
# Wrapper helpers                                                              #
# --------------------------------------------------------------------------- #
def _round_up(x, m):
    return (x + m - 1) // m * m


def _pad_gate_cols(w, H, Hp):
    """(rows, 4H) -> (rows, 4Hp): gate blocks [i|f|g|o] each zero-padded H -> Hp."""
    rows = w.shape[0]
    out = jnp.zeros((rows, 4 * Hp), w.dtype)
    for k in range(4):
        out = out.at[:, k * Hp:k * Hp + H].set(w[:, k * H:(k + 1) * H])
    return out


def _pick_t_block(S, B, Hp, vmem_budget_bytes=8 * 1024 * 1024):
    """Largest divisor of S whose double-buffered gates_x chunk fits the budget
    (conservative so the same choice is safe on v7x's 64 MiB VMEM)."""
    per_step = B * 4 * Hp * 4                       # f32 bytes per timestep
    cap = max(1, min(16, vmem_budget_bytes // (2 * per_step)))
    for tb in range(min(S, cap), 0, -1):
        if S % tb == 0:
            return tb
    return 1


def _pick_batch_blocks(B, max_blocks=2):
    """Split batch across cores only if each block stays sublane-aligned (mult. of 8)."""
    for nb in range(max_blocks, 1, -1):
        if B % nb == 0 and (B // nb) % 8 == 0:
            return nb
    return 1


# --------------------------------------------------------------------------- #
# Forward pass                                                                 #
# --------------------------------------------------------------------------- #
def lstm_model_forward(x, params, matmul_dtype=jnp.bfloat16):
    """x: (batch, seq, input_size) float32  ->  logits (batch, num_classes)."""
    w_ih, w_hh, b_ih, b_hh, w_fc, b_fc = (
        params["w_ih"], params["w_hh"], params["b_ih"], params["b_hh"],
        params["w_fc"], params["b_fc"])

    B, S, I = x.shape
    H = w_hh.shape[1]                        # w_hh: (4H, H)
    Hp = _round_up(H, 128)                   # lane-aligned hidden width

    # -- Hoisted input projection: one big matmul over all timesteps ---------- #
    wi_t = _pad_gate_cols(w_ih.T.astype(jnp.float32), H, Hp)            # (I, 4Hp)
    bias = _pad_gate_cols((b_ih + b_hh).reshape(1, 4 * H).astype(jnp.float32),
                          H, Hp)                                        # (1, 4Hp)
    x_tm = jnp.transpose(x, (1, 0, 2)).astype(jnp.float32)              # (S, B, I)
    gates_x = (jnp.dot(x_tm.reshape(S * B, I).astype(matmul_dtype),
                       wi_t.astype(matmul_dtype),
                       preferred_element_type=jnp.float32)
               + bias).reshape(S, B, 4 * Hp)                            # f32

    # -- Padded recurrent weight (rows H->Hp, gate cols H->Hp), bf16 for MXU -- #
    wh_t = _pad_gate_cols(w_hh.T.astype(jnp.float32), H, Hp)            # (H, 4Hp)
    wh_t = jnp.zeros((Hp, 4 * Hp), jnp.float32).at[:H, :].set(wh_t)
    wh_t = wh_t.astype(matmul_dtype)                                    # (Hp, 4Hp)

    t_block = _pick_t_block(S, B, Hp)
    nb = _pick_batch_blocks(B)
    b_blk = B // nb
    nt = S // t_block

    grid_spec = pltpu.PrefetchScalarGridSpec(
        num_scalar_prefetch=0,
        grid=(nb, nt),                                   # (batch-parallel, time-serial)
        in_specs=[
            pl.BlockSpec((t_block, b_blk, 4 * Hp), lambda b, t: (t, b, 0)),  # gates_x
            pl.BlockSpec((Hp, 4 * Hp), lambda b, t: (0, 0)),                 # Wh_T
        ],
        out_specs=pl.BlockSpec((b_blk, Hp), lambda b, t: (b, 0)),            # h_last
        scratch_shapes=[
            pltpu.VMEM((b_blk, Hp), jnp.float32),        # h state
            pltpu.VMEM((b_blk, Hp), jnp.float32),        # c state
        ],
    )

    h_last = pl.pallas_call(
        _lstm_recurrence_kernel,
        out_shape=jax.ShapeDtypeStruct((B, Hp), jnp.float32),
        grid_spec=grid_spec,
        compiler_params=pltpu.CompilerParams(
            dimension_semantics=("parallel", "arbitrary"),
            vmem_limit_bytes=32 * 1024 * 1024),
    )(gates_x, wh_t)

    # -- Final Linear on the last hidden state (lane-sparse C -> keep in XLA) -- #
    return (h_last[:, :H] @ w_fc.T.astype(jnp.float32)
            + b_fc.astype(jnp.float32))


# --------------------------------------------------------------------------- #
# Params + reference                                                           #
# --------------------------------------------------------------------------- #
def init_params(key, input_size, hidden_size, num_classes):
    """Deterministic synthetic params, PyTorch nn.LSTM / nn.Linear shapes."""
    ks = jax.random.split(key, 6)
    scale = 1.0 / jnp.sqrt(hidden_size)
    return {
        "w_ih": jax.random.uniform(ks[0], (4 * hidden_size, input_size),
                                   jnp.float32, -scale, scale),
        "w_hh": jax.random.uniform(ks[1], (4 * hidden_size, hidden_size),
                                   jnp.float32, -scale, scale),
        "b_ih": jax.random.uniform(ks[2], (4 * hidden_size,),
                                   jnp.float32, -scale, scale),
        "b_hh": jax.random.uniform(ks[3], (4 * hidden_size,),
                                   jnp.float32, -scale, scale),
        "w_fc": jax.random.uniform(ks[4], (num_classes, hidden_size),
                                   jnp.float32, -scale, scale),
        "b_fc": jax.random.uniform(ks[5], (num_classes,),
                                   jnp.float32, -scale, scale),
    }


def _reference_forward(x, params):
    """Pure-JAX f32 reference of the PyTorch forward."""
    w_ih, w_hh, b_ih, b_hh = (params["w_ih"], params["w_hh"],
                              params["b_ih"], params["b_hh"])
    H = w_hh.shape[1]
    B = x.shape[0]
    h = jnp.zeros((B, H), jnp.float32)
    c = jnp.zeros((B, H), jnp.float32)
    for t in range(x.shape[1]):
        gates = x[:, t, :] @ w_ih.T + b_ih + h @ w_hh.T + b_hh
        i = jax.nn.sigmoid(gates[:, 0 * H:1 * H])
        f = jax.nn.sigmoid(gates[:, 1 * H:2 * H])
        g = jnp.tanh(gates[:, 2 * H:3 * H])
        o = jax.nn.sigmoid(gates[:, 3 * H:4 * H])
        c = f * c + i * g
        h = o * jnp.tanh(c)
    return h @ params["w_fc"].T + params["b_fc"]


if __name__ == "__main__":
    batch, seq, input_size, hidden_size, num_classes = 2, 8, 16, 64, 4

    key = jax.random.PRNGKey(0)
    k_x, k_p = jax.random.split(key)
    x = jax.random.normal(k_x, (batch, seq, input_size), jnp.float32)
    params = init_params(k_p, input_size, hidden_size, num_classes)

    out = lstm_model_forward(x, params)
    out = jax.block_until_ready(out)

    ref = _reference_forward(x, params)
    assert out.shape == (batch, num_classes)
    # bf16 matmul operands (f32 accumulation) -> compare with a looser tolerance.
    assert jnp.allclose(out, ref, atol=2e-2, rtol=2e-2), "mismatch vs reference"

    print("KERNEL_OK")
</pallas_src>

<mosaic_0001>
module attributes {stable_mosaic.version = 11 : i64} {
  func.func @_lstm_recurrence_kernel(%arg0: i32, %arg1: i32, %arg2: memref<8x2x512xf32, #tpu.memory_space<vmem>>, %arg3: memref<128x512xbf16, #tpu.memory_space<vmem>>, %arg4: memref<2x128xf32, #tpu.memory_space<vmem>>, %arg5: memref<2x128xf32, #tpu.memory_space<vmem>>, %arg6: memref<2x128xf32, #tpu.memory_space<vmem>>) attributes {dimension_semantics = [#tpu.dimension_semantics<parallel>, #tpu.dimension_semantics<arbitrary>], iteration_bounds = array<i64: 1, 1>, scalar_prefetch = 0 : i64, scratch_operands = 2 : i64, tpu.core_type = #tpu.core_type<tc>, window_params = [{transform_indices = @transform_0, window_bounds = array<i64: 8, 2, 512>}, {pipeline_mode = #tpu.pipeline_mode<synchronous>, transform_indices = @transform_1, window_bounds = array<i64: 128, 512>}, {transform_indices = @transform_2, window_bounds = array<i64: 2, 128>}]} {
    %c0_i32 = arith.constant 0 : i32
    %0 = arith.cmpi eq, %arg1, %c0_i32 : i32
    %1 = arith.extui %0 : i1 to i32
    %c0_i32_0 = arith.constant 0 : i32
    %2 = arith.cmpi ne, %1, %c0_i32_0 : i32
    scf.if %2 {
      %cst_60 = arith.constant 0.000000e+00 : f32
      %259 = vector.broadcast %cst_60 : f32 to vector<2x128xf32>
      %c0_61 = arith.constant 0 : index
      %c0_62 = arith.constant 0 : index
      %260 = vector.load %arg5[%c0_61, %c0_62] : memref<2x128xf32, #tpu.memory_space<vmem>>, vector<2x128xf32>
      tpu.vector_store %arg5[%c0_61, %c0_62], %259 {strides = array<i32>} : memref<2x128xf32, #tpu.memory_space<vmem>>, vector<2x128xf32>,
      %cst_63 = arith.constant 0.000000e+00 : f32
      %261 = vector.broadcast %cst_63 : f32 to vector<2x128xf32>
      %c0_64 = arith.constant 0 : index
      %c0_65 = arith.constant 0 : index
      %262 = vector.load %arg6[%c0_64, %c0_65] : memref<2x128xf32, #tpu.memory_space<vmem>>, vector<2x128xf32>
      tpu.vector_store %arg6[%c0_64, %c0_65], %261 {strides = array<i32>} : memref<2x128xf32, #tpu.memory_space<vmem>>, vector<2x128xf32>,
    } else {
    }
    %c0 = arith.constant 0 : index
    %c0_1 = arith.constant 0 : index
    %3 = vector.load %arg3[%c0, %c0_1] : memref<128x512xbf16, #tpu.memory_space<vmem>>, vector<128x512xbf16>
    %c0_2 = arith.constant 0 : index
    %c0_3 = arith.constant 0 : index
    %4 = vector.load %arg5[%c0_2, %c0_3] : memref<2x128xf32, #tpu.memory_space<vmem>>, vector<2x128xf32>
    %c0_4 = arith.constant 0 : index
    %c0_5 = arith.constant 0 : index
    %5 = vector.load %arg6[%c0_4, %c0_5] : memref<2x128xf32, #tpu.memory_space<vmem>>, vector<2x128xf32>
    %c0_i32_6 = arith.constant 0 : i32
    %6 = arith.index_cast %c0_i32_6 : i32 to index
    %c0_7 = arith.constant 0 : index
    %c0_8 = arith.constant 0 : index
    %7 = vector.load %arg2[%6, %c0_7, %c0_8] : memref<8x2x512xf32, #tpu.memory_space<vmem>>, vector<1x2x512xf32>
    %8 = vector.shape_cast %7 : vector<1x2x512xf32> to vector<2x512xf32>
    %9 = arith.truncf %4 : vector<2x128xf32> to vector<2x128xbf16>
    %cst = arith.constant dense<0.000000e+00> : vector<2x512xf32>
    %10 = tpu.matmul %9, %3, %cst {dimension_numbers = #tpu.dot_dimension_numbers<[1], [0], [0], [1], [0, 0, 1, 1], [], []>} : vector<2x128xbf16>, vector<128x512xbf16>, vector<2x512xf32> -> vector<2x512xf32>
    %11 = arith.addf %8, %10 : vector<2x512xf32>
    %12 = vector.extract_strided_slice %11 {offsets = [0, 0], sizes = [2, 128], strides = [1, 1]} : vector<2x512xf32> to vector<2x128xf32>
    %13 = arith.negf %12 : vector<2x128xf32>
    %14 = math.exp %13 : vector<2x128xf32>
    %cst_9 = arith.constant 1.000000e+00 : f32
    %15 = vector.broadcast %cst_9 : f32 to vector<2x128xf32>
    %16 = arith.addf %15, %14 : vector<2x128xf32>
    %17 = arith.divf %15, %16 : vector<2x128xf32>
    %18 = vector.extract_strided_slice %11 {offsets = [0, 128], sizes = [2, 128], strides = [1, 1]} : vector<2x512xf32> to vector<2x128xf32>
    %19 = arith.negf %18 : vector<2x128xf32>
    %20 = math.exp %19 : vector<2x128xf32>
    %cst_10 = arith.constant 1.000000e+00 : f32
    %21 = vector.broadcast %cst_10 : f32 to vector<2x128xf32>
    %22 = arith.addf %21, %20 : vector<2x128xf32>
    %23 = arith.divf %21, %22 : vector<2x128xf32>
    %24 = vector.extract_strided_slice %11 {offsets = [0, 256], sizes = [2, 128], strides = [1, 1]} : vector<2x512xf32> to vector<2x128xf32>
    %25 = math.tanh %24 : vector<2x128xf32>
    %26 = vector.extract_strided_slice %11 {offsets = [0, 384], sizes = [2, 128], strides = [1, 1]} : vector<2x512xf32> to vector<2x128xf32>
    %27 = arith.negf %26 : vector<2x128xf32>
    %28 = math.exp %27 : vector<2x128xf32>
    %cst_11 = arith.constant 1.000000e+00 : f32
    %29 = vector.broadcast %cst_11 : f32 to vector<2x128xf32>
    %30 = arith.addf %29, %28 : vector<2x128xf32>
    %31 = arith.divf %29, %30 : vector<2x128xf32>
    %32 = arith.mulf %23, %5 : vector<2x128xf32>
    %33 = arith.mulf %17, %25 : vector<2x128xf32>
    %34 = arith.addf %32, %33 : vector<2x128xf32>
    %35 = math.tanh %34 : vector<2x128xf32>
    %36 = arith.mulf %31, %35 : vector<2x128xf32>
    %c1_i32 = arith.constant 1 : i32
    %37 = arith.index_cast %c1_i32 : i32 to index
    %c0_12 = arith.constant 0 : index
    %c0_13 = arith.constant 0 : index
    %38 = vector.load %arg2[%37, %c0_12, %c0_13] : memref<8x2x512xf32, #tpu.memory_space<vmem>>, vector<1x2x512xf32>
    %39 = vector.shape_cast %38 : vector<1x2x512xf32> to vector<2x512xf32>
    %40 = arith.truncf %36 : vector<2x128xf32> to vector<2x128xbf16>
    %cst_14 = arith.constant dense<0.000000e+00> : vector<2x512xf32>
    %41 = tpu.matmul %40, %3, %cst_14 {dimension_numbers = #tpu.dot_dimension_numbers<[1], [0], [0], [1], [0, 0, 1, 1], [], []>} : vector<2x128xbf16>, vector<128x512xbf16>, vector<2x512xf32> -> vector<2x512xf32>
    %42 = arith.addf %39, %41 : vector<2x512xf32>
    %43 = vector.extract_strided_slice %42 {offsets = [0, 0], sizes = [2, 128], strides = [1, 1]} : vector<2x512xf32> to vector<2x128xf32>
    %44 = arith.negf %43 : vector<2x128xf32>
    %45 = math.exp %44 : vector<2x128xf32>
    %cst_15 = arith.constant 1.000000e+00 : f32
    %46 = vector.broadcast %cst_15 : f32 to vector<2x128xf32>
    %47 = arith.addf %46, %45 : vector<2x128xf32>
    %48 = arith.divf %46, %47 : vector<2x128xf32>
    %49 = vector.extract_strided_slice %42 {offsets = [0, 128], sizes = [2, 128], strides = [1, 1]} : vector<2x512xf32> to vector<2x128xf32>
    %50 = arith.negf %49 : vector<2x128xf32>
    %51 = math.exp %50 : vector<2x128xf32>
    %cst_16 = arith.constant 1.000000e+00 : f32
    %52 = vector.broadcast %cst_16 : f32 to vector<2x128xf32>
    %53 = arith.addf %52, %51 : vector<2x128xf32>
    %54 = arith.divf %52, %53 : vector<2x128xf32>
    %55 = vector.extract_strided_slice %42 {offsets = [0, 256], sizes = [2, 128], strides = [1, 1]} : vector<2x512xf32> to vector<2x128xf32>
    %56 = math.tanh %55 : vector<2x128xf32>
    %57 = vector.extract_strided_slice %42 {offsets = [0, 384], sizes = [2, 128], strides = [1, 1]} : vector<2x512xf32> to vector<2x128xf32>
    %58 = arith.negf %57 : vector<2x128xf32>
    %59 = math.exp %58 : vector<2x128xf32>
    %cst_17 = arith.constant 1.000000e+00 : f32
    %60 = vector.broadcast %cst_17 : f32 to vector<2x128xf32>
    %61 = arith.addf %60, %59 : vector<2x128xf32>
    %62 = arith.divf %60, %61 : vector<2x128xf32>
    %63 = arith.mulf %54, %34 : vector<2x128xf32>
    %64 = arith.mulf %48, %56 : vector<2x128xf32>
    %65 = arith.addf %63, %64 : vector<2x128xf32>
    %66 = math.tanh %65 : vector<2x128xf32>
    %67 = arith.mulf %62, %66 : vector<2x128xf32>
    %c2_i32 = arith.constant 2 : i32
    %68 = arith.index_cast %c2_i32 : i32 to index
    %c0_18 = arith.constant 0 : index
    %c0_19 = arith.constant 0 : index
    %69 = vector.load %arg2[%68, %c0_18, %c0_19] : memref<8x2x512xf32, #tpu.memory_space<vmem>>, vector<1x2x512xf32>
    %70 = vector.shape_cast %69 : vector<1x2x512xf32> to vector<2x512xf32>
    %71 = arith.truncf %67 : vector<2x128xf32> to vector<2x128xbf16>
    %cst_20 = arith.constant dense<0.000000e+00> : vector<2x512xf32>
    %72 = tpu.matmul %71, %3, %cst_20 {dimension_numbers = #tpu.dot_dimension_numbers<[1], [0], [0], [1], [0, 0, 1, 1], [], []>} : vector<2x128xbf16>, vector<128x512xbf16>, vector<2x512xf32> -> vector<2x512xf32>
    %73 = arith.addf %70, %72 : vector<2x512xf32>
    %74 = vector.extract_strided_slice %73 {offsets = [0, 0], sizes = [2, 128], strides = [1, 1]} : vector<2x512xf32> to vector<2x128xf32>
    %75 = arith.negf %74 : vector<2x128xf32>
    %76 = math.exp %75 : vector<2x128xf32>
    %cst_21 = arith.constant 1.000000e+00 : f32
    %77 = vector.broadcast %cst_21 : f32 to vector<2x128xf32>
    %78 = arith.addf %77, %76 : vector<2x128xf32>
    %79 = arith.divf %77, %78 : vector<2x128xf32>
    %80 = vector.extract_strided_slice %73 {offsets = [0, 128], sizes = [2, 128], strides = [1, 1]} : vector<2x512xf32> to vector<2x128xf32>
    %81 = arith.negf %80 : vector<2x128xf32>
    %82 = math.exp %81 : vector<2x128xf32>
    %cst_22 = arith.constant 1.000000e+00 : f32
    %83 = vector.broadcast %cst_22 : f32 to vector<2x128xf32>
    %84 = arith.addf %83, %82 : vector<2x128xf32>
    %85 = arith.divf %83, %84 : vector<2x128xf32>
    %86 = vector.extract_strided_slice %73 {offsets = [0, 256], sizes = [2, 128], strides = [1, 1]} : vector<2x512xf32> to vector<2x128xf32>
    %87 = math.tanh %86 : vector<2x128xf32>
    %88 = vector.extract_strided_slice %73 {offsets = [0, 384], sizes = [2, 128], strides = [1, 1]} : vector<2x512xf32> to vector<2x128xf32>
    %89 = arith.negf %88 : vector<2x128xf32>
    %90 = math.exp %89 : vector<2x128xf32>
    %cst_23 = arith.constant 1.000000e+00 : f32
    %91 = vector.broadcast %cst_23 : f32 to vector<2x128xf32>
    %92 = arith.addf %91, %90 : vector<2x128xf32>
    %93 = arith.divf %91, %92 : vector<2x128xf32>
    %94 = arith.mulf %85, %65 : vector<2x128xf32>
    %95 = arith.mulf %79, %87 : vector<2x128xf32>
    %96 = arith.addf %94, %95 : vector<2x128xf32>
    %97 = math.tanh %96 : vector<2x128xf32>
    %98 = arith.mulf %93, %97 : vector<2x128xf32>
    %c3_i32 = arith.constant 3 : i32
    %99 = arith.index_cast %c3_i32 : i32 to index
    %c0_24 = arith.constant 0 : index
    %c0_25 = arith.constant 0 : index
    %100 = vector.load %arg2[%99, %c0_24, %c0_25] : memref<8x2x512xf32, #tpu.memory_space<vmem>>, vector<1x2x512xf32>
    %101 = vector.shape_cast %100 : vector<1x2x512xf32> to vector<2x512xf32>
    %102 = arith.truncf %98 : vector<2x128xf32> to vector<2x128xbf16>
    %cst_26 = arith.constant dense<0.000000e+00> : vector<2x512xf32>
    %103 = tpu.matmul %102, %3, %cst_26 {dimension_numbers = #tpu.dot_dimension_numbers<[1], [0], [0], [1], [0, 0, 1, 1], [], []>} : vector<2x128xbf16>, vector<128x512xbf16>, vector<2x512xf32> -> vector<2x512xf32>
    %104 = arith.addf %101, %103 : vector<2x512xf32>
    %105 = vector.extract_strided_slice %104 {offsets = [0, 0], sizes = [2, 128], strides = [1, 1]} : vector<2x512xf32> to vector<2x128xf32>
    %106 = arith.negf %105 : vector<2x128xf32>
    %107 = math.exp %106 : vector<2x128xf32>
    %cst_27 = arith.constant 1.000000e+00 : f32
    %108 = vector.broadcast %cst_27 : f32 to vector<2x128xf32>
    %109 = arith.addf %108, %107 : vector<2x128xf32>
    %110 = arith.divf %108, %109 : vector<2x128xf32>
    %111 = vector.extract_strided_slice %104 {offsets = [0, 128], sizes = [2, 128], strides = [1, 1]} : vector<2x512xf32> to vector<2x128xf32>
    %112 = arith.negf %111 : vector<2x128xf32>
    %113 = math.exp %112 : vector<2x128xf32>
    %cst_28 = arith.constant 1.000000e+00 : f32
    %114 = vector.broadcast %cst_28 : f32 to vector<2x128xf32>
    %115 = arith.addf %114, %113 : vector<2x128xf32>
    %116 = arith.divf %114, %115 : vector<2x128xf32>
    %117 = vector.extract_strided_slice %104 {offsets = [0, 256], sizes = [2, 128], strides = [1, 1]} : vector<2x512xf32> to vector<2x128xf32>
    %118 = math.tanh %117 : vector<2x128xf32>
    %119 = vector.extract_strided_slice %104 {offsets = [0, 384], sizes = [2, 128], strides = [1, 1]} : vector<2x512xf32> to vector<2x128xf32>
    %120 = arith.negf %119 : vector<2x128xf32>
    %121 = math.exp %120 : vector<2x128xf32>
    %cst_29 = arith.constant 1.000000e+00 : f32
    %122 = vector.broadcast %cst_29 : f32 to vector<2x128xf32>
    %123 = arith.addf %122, %121 : vector<2x128xf32>
    %124 = arith.divf %122, %123 : vector<2x128xf32>
    %125 = arith.mulf %116, %96 : vector<2x128xf32>
    %126 = arith.mulf %110, %118 : vector<2x128xf32>
    %127 = arith.addf %125, %126 : vector<2x128xf32>
    %128 = math.tanh %127 : vector<2x128xf32>
    %129 = arith.mulf %124, %128 : vector<2x128xf32>
    %c4_i32 = arith.constant 4 : i32
    %130 = arith.index_cast %c4_i32 : i32 to index
    %c0_30 = arith.constant 0 : index
    %c0_31 = arith.constant 0 : index
    %131 = vector.load %arg2[%130, %c0_30, %c0_31] : memref<8x2x512xf32, #tpu.memory_space<vmem>>, vector<1x2x512xf32>
    %132 = vector.shape_cast %131 : vector<1x2x512xf32> to vector<2x512xf32>
    %133 = arith.truncf %129 : vector<2x128xf32> to vector<2x128xbf16>
    %cst_32 = arith.constant dense<0.000000e+00> : vector<2x512xf32>
    %134 = tpu.matmul %133, %3, %cst_32 {dimension_numbers = #tpu.dot_dimension_numbers<[1], [0], [0], [1], [0, 0, 1, 1], [], []>} : vector<2x128xbf16>, vector<128x512xbf16>, vector<2x512xf32> -> vector<2x512xf32>
    %135 = arith.addf %132, %134 : vector<2x512xf32>
    %136 = vector.extract_strided_slice %135 {offsets = [0, 0], sizes = [2, 128], strides = [1, 1]} : vector<2x512xf32> to vector<2x128xf32>
    %137 = arith.negf %136 : vector<2x128xf32>
    %138 = math.exp %137 : vector<2x128xf32>
    %cst_33 = arith.constant 1.000000e+00 : f32
    %139 = vector.broadcast %cst_33 : f32 to vector<2x128xf32>
    %140 = arith.addf %139, %138 : vector<2x128xf32>
    %141 = arith.divf %139, %140 : vector<2x128xf32>
    %142 = vector.extract_strided_slice %135 {offsets = [0, 128], sizes = [2, 128], strides = [1, 1]} : vector<2x512xf32> to vector<2x128xf32>
    %143 = arith.negf %142 : vector<2x128xf32>
    %144 = math.exp %143 : vector<2x128xf32>
    %cst_34 = arith.constant 1.000000e+00 : f32
    %145 = vector.broadcast %cst_34 : f32 to vector<2x128xf32>
    %146 = arith.addf %145, %144 : vector<2x128xf32>
    %147 = arith.divf %145, %146 : vector<2x128xf32>
    %148 = vector.extract_strided_slice %135 {offsets = [0, 256], sizes = [2, 128], strides = [1, 1]} : vector<2x512xf32> to vector<2x128xf32>
    %149 = math.tanh %148 : vector<2x128xf32>
    %150 = vector.extract_strided_slice %135 {offsets = [0, 384], sizes = [2, 128], strides = [1, 1]} : vector<2x512xf32> to vector<2x128xf32>
    %151 = arith.negf %150 : vector<2x128xf32>
    %152 = math.exp %151 : vector<2x128xf32>
    %cst_35 = arith.constant 1.000000e+00 : f32
    %153 = vector.broadcast %cst_35 : f32 to vector<2x128xf32>
    %154 = arith.addf %153, %152 : vector<2x128xf32>
    %155 = arith.divf %153, %154 : vector<2x128xf32>
    %156 = arith.mulf %147, %127 : vector<2x128xf32>
    %157 = arith.mulf %141, %149 : vector<2x128xf32>
    %158 = arith.addf %156, %157 : vector<2x128xf32>
    %159 = math.tanh %158 : vector<2x128xf32>
    %160 = arith.mulf %155, %159 : vector<2x128xf32>
    %c5_i32 = arith.constant 5 : i32
    %161 = arith.index_cast %c5_i32 : i32 to index
    %c0_36 = arith.constant 0 : index
    %c0_37 = arith.constant 0 : index
    %162 = vector.load %arg2[%161, %c0_36, %c0_37] : memref<8x2x512xf32, #tpu.memory_space<vmem>>, vector<1x2x512xf32>
    %163 = vector.shape_cast %162 : vector<1x2x512xf32> to vector<2x512xf32>
    %164 = arith.truncf %160 : vector<2x128xf32> to vector<2x128xbf16>
    %cst_38 = arith.constant dense<0.000000e+00> : vector<2x512xf32>
    %165 = tpu.matmul %164, %3, %cst_38 {dimension_numbers = #tpu.dot_dimension_numbers<[1], [0], [0], [1], [0, 0, 1, 1], [], []>} : vector<2x128xbf16>, vector<128x512xbf16>, vector<2x512xf32> -> vector<2x512xf32>
    %166 = arith.addf %163, %165 : vector<2x512xf32>
    %167 = vector.extract_strided_slice %166 {offsets = [0, 0], sizes = [2, 128], strides = [1, 1]} : vector<2x512xf32> to vector<2x128xf32>
    %168 = arith.negf %167 : vector<2x128xf32>
    %169 = math.exp %168 : vector<2x128xf32>
    %cst_39 = arith.constant 1.000000e+00 : f32
    %170 = vector.broadcast %cst_39 : f32 to vector<2x128xf32>
    %171 = arith.addf %170, %169 : vector<2x128xf32>
    %172 = arith.divf %170, %171 : vector<2x128xf32>
    %173 = vector.extract_strided_slice %166 {offsets = [0, 128], sizes = [2, 128], strides = [1, 1]} : vector<2x512xf32> to vector<2x128xf32>
    %174 = arith.negf %173 : vector<2x128xf32>
    %175 = math.exp %174 : vector<2x128xf32>
    %cst_40 = arith.constant 1.000000e+00 : f32
    %176 = vector.broadcast %cst_40 : f32 to vector<2x128xf32>
    %177 = arith.addf %176, %175 : vector<2x128xf32>
    %178 = arith.divf %176, %177 : vector<2x128xf32>
    %179 = vector.extract_strided_slice %166 {offsets = [0, 256], sizes = [2, 128], strides = [1, 1]} : vector<2x512xf32> to vector<2x128xf32>
    %180 = math.tanh %179 : vector<2x128xf32>
    %181 = vector.extract_strided_slice %166 {offsets = [0, 384], sizes = [2, 128], strides = [1, 1]} : vector<2x512xf32> to vector<2x128xf32>
    %182 = arith.negf %181 : vector<2x128xf32>
    %183 = math.exp %182 : vector<2x128xf32>
    %cst_41 = arith.constant 1.000000e+00 : f32
    %184 = vector.broadcast %cst_41 : f32 to vector<2x128xf32>
    %185 = arith.addf %184, %183 : vector<2x128xf32>
    %186 = arith.divf %184, %185 : vector<2x128xf32>
    %187 = arith.mulf %178, %158 : vector<2x128xf32>
    %188 = arith.mulf %172, %180 : vector<2x128xf32>
    %189 = arith.addf %187, %188 : vector<2x128xf32>
    %190 = math.tanh %189 : vector<2x128xf32>
    %191 = arith.mulf %186, %190 : vector<2x128xf32>
    %c6_i32 = arith.constant 6 : i32
    %192 = arith.index_cast %c6_i32 : i32 to index
    %c0_42 = arith.constant 0 : index
    %c0_43 = arith.constant 0 : index
    %193 = vector.load %arg2[%192, %c0_42, %c0_43] : memref<8x2x512xf32, #tpu.memory_space<vmem>>, vector<1x2x512xf32>
    %194 = vector.shape_cast %193 : vector<1x2x512xf32> to vector<2x512xf32>
    %195 = arith.truncf %191 : vector<2x128xf32> to vector<2x128xbf16>
    %cst_44 = arith.constant dense<0.000000e+00> : vector<2x512xf32>
    %196 = tpu.matmul %195, %3, %cst_44 {dimension_numbers = #tpu.dot_dimension_numbers<[1], [0], [0], [1], [0, 0, 1, 1], [], []>} : vector<2x128xbf16>, vector<128x512xbf16>, vector<2x512xf32> -> vector<2x512xf32>
    %197 = arith.addf %194, %196 : vector<2x512xf32>
    %198 = vector.extract_strided_slice %197 {offsets = [0, 0], sizes = [2, 128], strides = [1, 1]} : vector<2x512xf32> to vector<2x128xf32>
    %199 = arith.negf %198 : vector<2x128xf32>
    %200 = math.exp %199 : vector<2x128xf32>
    %cst_45 = arith.constant 1.000000e+00 : f32
    %201 = vector.broadcast %cst_45 : f32 to vector<2x128xf32>
    %202 = arith.addf %201, %200 : vector<2x128xf32>
    %203 = arith.divf %201, %202 : vector<2x128xf32>
    %204 = vector.extract_strided_slice %197 {offsets = [0, 128], sizes = [2, 128], strides = [1, 1]} : vector<2x512xf32> to vector<2x128xf32>
    %205 = arith.negf %204 : vector<2x128xf32>
    %206 = math.exp %205 : vector<2x128xf32>
    %cst_46 = arith.constant 1.000000e+00 : f32
    %207 = vector.broadcast %cst_46 : f32 to vector<2x128xf32>
    %208 = arith.addf %207, %206 : vector<2x128xf32>
    %209 = arith.divf %207, %208 : vector<2x128xf32>
    %210 = vector.extract_strided_slice %197 {offsets = [0, 256], sizes = [2, 128], strides = [1, 1]} : vector<2x512xf32> to vector<2x128xf32>
    %211 = math.tanh %210 : vector<2x128xf32>
    %212 = vector.extract_strided_slice %197 {offsets = [0, 384], sizes = [2, 128], strides = [1, 1]} : vector<2x512xf32> to vector<2x128xf32>
    %213 = arith.negf %212 : vector<2x128xf32>
    %214 = math.exp %213 : vector<2x128xf32>
    %cst_47 = arith.constant 1.000000e+00 : f32
    %215 = vector.broadcast %cst_47 : f32 to vector<2x128xf32>
    %216 = arith.addf %215, %214 : vector<2x128xf32>
    %217 = arith.divf %215, %216 : vector<2x128xf32>
    %218 = arith.mulf %209, %189 : vector<2x128xf32>
    %219 = arith.mulf %203, %211 : vector<2x128xf32>
    %220 = arith.addf %218, %219 : vector<2x128xf32>
    %221 = math.tanh %220 : vector<2x128xf32>
    %222 = arith.mulf %217, %221 : vector<2x128xf32>
    %c7_i32 = arith.constant 7 : i32
    %223 = arith.index_cast %c7_i32 : i32 to index
    %c0_48 = arith.constant 0 : index
    %c0_49 = arith.constant 0 : index
    %224 = vector.load %arg2[%223, %c0_48, %c0_49] : memref<8x2x512xf32, #tpu.memory_space<vmem>>, vector<1x2x512xf32>
    %225 = vector.shape_cast %224 : vector<1x2x512xf32> to vector<2x512xf32>
    %226 = arith.truncf %222 : vector<2x128xf32> to vector<2x128xbf16>
    %cst_50 = arith.constant dense<0.000000e+00> : vector<2x512xf32>
    %227 = tpu.matmul %226, %3, %cst_50 {dimension_numbers = #tpu.dot_dimension_numbers<[1], [0], [0], [1], [0, 0, 1, 1], [], []>} : vector<2x128xbf16>, vector<128x512xbf16>, vector<2x512xf32> -> vector<2x512xf32>
    %228 = arith.addf %225, %227 : vector<2x512xf32>
    %229 = vector.extract_strided_slice %228 {offsets = [0, 0], sizes = [2, 128], strides = [1, 1]} : vector<2x512xf32> to vector<2x128xf32>
    %230 = arith.negf %229 : vector<2x128xf32>
    %231 = math.exp %230 : vector<2x128xf32>
    %cst_51 = arith.constant 1.000000e+00 : f32
    %232 = vector.broadcast %cst_51 : f32 to vector<2x128xf32>
    %233 = arith.addf %232, %231 : vector<2x128xf32>
    %234 = arith.divf %232, %233 : vector<2x128xf32>
    %235 = vector.extract_strided_slice %228 {offsets = [0, 128], sizes = [2, 128], strides = [1, 1]} : vector<2x512xf32> to vector<2x128xf32>
    %236 = arith.negf %235 : vector<2x128xf32>
    %237 = math.exp %236 : vector<2x128xf32>
    %cst_52 = arith.constant 1.000000e+00 : f32
    %238 = vector.broadcast %cst_52 : f32 to vector<2x128xf32>
    %239 = arith.addf %238, %237 : vector<2x128xf32>
    %240 = arith.divf %238, %239 : vector<2x128xf32>
    %241 = vector.extract_strided_slice %228 {offsets = [0, 256], sizes = [2, 128], strides = [1, 1]} : vector<2x512xf32> to vector<2x128xf32>
    %242 = math.tanh %241 : vector<2x128xf32>
    %243 = vector.extract_strided_slice %228 {offsets = [0, 384], sizes = [2, 128], strides = [1, 1]} : vector<2x512xf32> to vector<2x128xf32>
    %244 = arith.negf %243 : vector<2x128xf32>
    %245 = math.exp %244 : vector<2x128xf32>
    %cst_53 = arith.constant 1.000000e+00 : f32
    %246 = vector.broadcast %cst_53 : f32 to vector<2x128xf32>
    %247 = arith.addf %246, %245 : vector<2x128xf32>
    %248 = arith.divf %246, %247 : vector<2x128xf32>
    %249 = arith.mulf %240, %220 : vector<2x128xf32>
    %250 = arith.mulf %234, %242 : vector<2x128xf32>
    %251 = arith.addf %249, %250 : vector<2x128xf32>
    %252 = math.tanh %251 : vector<2x128xf32>
    %253 = arith.mulf %248, %252 : vector<2x128xf32>
    %c8_i32 = arith.constant 8 : i32
    %c0_54 = arith.constant 0 : index
    %c0_55 = arith.constant 0 : index
    %254 = vector.load %arg5[%c0_54, %c0_55] : memref<2x128xf32, #tpu.memory_space<vmem>>, vector<2x128xf32>
    tpu.vector_store %arg5[%c0_54, %c0_55], %253 {strides = array<i32>} : memref<2x128xf32, #tpu.memory_space<vmem>>, vector<2x128xf32>,
    %c0_56 = arith.constant 0 : index
    %c0_57 = arith.constant 0 : index
    %255 = vector.load %arg6[%c0_56, %c0_57] : memref<2x128xf32, #tpu.memory_space<vmem>>, vector<2x128xf32>
    tpu.vector_store %arg6[%c0_56, %c0_57], %251 {strides = array<i32>} : memref<2x128xf32, #tpu.memory_space<vmem>>, vector<2x128xf32>,
    %c0_i32_58 = arith.constant 0 : i32
    %256 = arith.cmpi eq, %arg1, %c0_i32_58 : i32
    %257 = arith.extui %256 : i1 to i32
    %c0_i32_59 = arith.constant 0 : i32
    %258 = arith.cmpi ne, %257, %c0_i32_59 : i32
    scf.if %258 {
      %c0_60 = arith.constant 0 : index
      %c0_61 = arith.constant 0 : index
      %259 = vector.load %arg4[%c0_60, %c0_61] : memref<2x128xf32, #tpu.memory_space<vmem>>, vector<2x128xf32>
      tpu.vector_store %arg4[%c0_60, %c0_61], %253 {strides = array<i32>} : memref<2x128xf32, #tpu.memory_space<vmem>>, vector<2x128xf32>,
    } else {
    }
    return
  }
  func.func @transform_0(%arg0: i32, %arg1: i32) -> (i32, i32, i32) {
    %c0_i32 = arith.constant 0 : i32
    %c0_i32_0 = arith.constant 0 : i32
    return %arg1, %arg0, %c0_i32 : i32, i32, i32
  }
  func.func @transform_1(%arg0: i32, %arg1: i32) -> (i32, i32) {
    %c0_i32 = arith.constant 0 : i32
    %c0_i32_0 = arith.constant 0 : i32
    %c0_i32_1 = arith.constant 0 : i32
    return %c0_i32, %c0_i32_0 : i32, i32
  }
  func.func @transform_2(%arg0: i32, %arg1: i32) -> (i32, i32) {
    %c0_i32 = arith.constant 0 : i32
    %c0_i32_0 = arith.constant 0 : i32
    return %arg0, %c0_i32 : i32, i32
  }
}

</mosaic_0001>

<bundles_post_ra>
// kernel: tpu_custom_call.1
= control target key start
LH: loop header
LB: loop body
LE: loop exit
PB: predicated region body
PF: predicated region fallthrough
CT: control target
= control target key end

     0   :  { %7 = vsyncpa [#allocation5], 0  ;;  %s2127_s0 = inlined_call_operand.hbm [shape: f32[8,2,512], index: 0, kind: input, shape index: {}]   ;;  %s2128_s1 = inlined_call_operand.hbm [shape: bf16[128,512], index: 1, kind: input, shape index: {}]   ;;  %s2129_s2 = inlined_call_operand.hbm [shape: f32[2,128], index: 2, kind: output, shape index: {}]  }
   0x1   :  { %8 = vsyncpa [#allocation8], 0 }
   0x2   :  { %9 = vsyncpa [#allocation6], 0  ;;  %s1720_s9 = smov [#allocation4]   ;;  %s1648_s13 = scalar_lea.hbm %s2127_s0, 1024 }
   0x3   :  { %s15_s10 = sshll.u32 %s1720_s9, 4  ;;  %p1649_p0 = scmp.ne.s32.totalorder %s2127_s0, %s1648_s13  ;;  %s16_s10 = int_to_ptr.vmem [resolvable:$true] %s15_s10 }
   0x4   :  { %p1652_p1 = scmp.lt.u32.totalorder %s1648_s13, %s2127_s0 }
   0x6   :  { %p1654_p2 = pnand %p1652_p1, %p1649_p0 }
   0x8   :  { %1657 = shalt.err (!%p1654_p2)
}
   0x9   :  { %s1658_s18 = scalar_lea.vmem %s16_s10, 1024  ;;  %p1663_p4 = scmp.lt.s32.totalorder %s16_s10, %s16_s10 }
   0xa   :  { %p1659_p3 = scmp.ne.s32.totalorder %s16_s10, %s1658_s18  ;;  %p1664_p5 = scmp.lt.s32.totalorder %s1658_s18, %s1658_s18 }
   0xc   :  { %p1665_p6 = por %p1664_p5, %p1663_p4 }
   0xe   :  { %p1666_p7 = pnand %p1665_p6, %p1659_p3 }
  0x10   :  { %1669 = shalt.err (!%p1666_p7)
}
  0x11   :  { %s1721_s19 = smov 128   ;;  %s1722_s20 = smov 8  }
  0x12   :  { %21 = dma.hbm_to_vmem [thread:$0]  %s2127_s0, 1024, %s16_s10, [#allocation5], %s1721_s19, %s1721_s19, %s1722_s20  }
  0x13   :  { %s1723_s23 = smov [#allocation7]   ;;  %s1670_s27 = scalar_lea.hbm %s2128_s1, 4096 }
  0x14   :  { %s27_s24 = sshll.u32 %s1723_s23, 4  ;;  %p1671_p8 = scmp.ne.s32.totalorder %s2128_s1, %s1670_s27  ;;  %s28_s24 = int_to_ptr.vmem [resolvable:$true] %s27_s24 }
  0x15   :  { %p1674_p9 = scmp.lt.u32.totalorder %s1670_s27, %s2128_s1 }
  0x17   :  { %p1676_p10 = pnand %p1674_p9, %p1671_p8 }
  0x19   :  { %1679 = shalt.err (!%p1676_p10)
}
  0x1a   :  { %s1680_s4 = scalar_lea.vmem %s28_s24, 4096  ;;  %p1685_p12 = scmp.lt.s32.totalorder %s28_s24, %s28_s24 }
  0x1b   :  { %p1681_p11 = scmp.ne.s32.totalorder %s28_s24, %s1680_s4  ;;  %p1686_p13 = scmp.lt.s32.totalorder %s1680_s4, %s1680_s4 }
  0x1d   :  { %p1687_p0 = por %p1686_p13, %p1685_p12 }
  0x1f   :  { %p1688_p1 = pnand %p1687_p0, %p1681_p11 }
  0x21   :  { %1691 = shalt.err (!%p1688_p1)
}
  0x22   :  { %s1724_s0 = smov 256   ;;  %s1725_s5 = smov 16  }
  0x23   :  { %33 = dma.hbm_to_vmem [thread:$0]  %s2128_s1, 4096, %s28_s24, [#allocation8], %s1724_s0, %s1724_s0, %s1725_s5  }
  0x24   :  { %1714 = dma.done.wait [#allocation5], 1024  }
  0x25   :  { %1715 = vsyncadd [#allocation5], 4294966272 }
  0x26   :  { %1716 = dma.done.wait [#allocation8], 4096  }
  0x27   :  { %1717 = vsyncadd [#allocation8], 4294963200  ;;  %v1726_v0 = vmov 0   ;;  %v1727_v1 = vmov 0.0   ;;  %v1771_v2 = vld [vmem:[#allocation7 + $0x4] ss:$16 sps:$4 sm:$0xff]   ;;  %v334_v38 = vlaneseq }
  0x28   :  { %275 = vmatprep.mubr.bf16.mxu0 %v1726_v0  ;;  %316 = vmatprep.mubr.bf16.mxu1 %v1726_v0  ;;  %45 = vst [vmem:[#allocation2] sm:$0x3] %v1727_v1  ;;  %46 = vst [vmem:[#allocation3] sm:$0x3] %v1727_v1  ;;  %v1773_v3 = vld [vmem:[#allocation7 + $0xc] ss:$16 sps:$4 sm:$0xff]  }
  0x29   :  { %243 = vmatprep.subr.bf16.mxu0 %v1771_v2  ;;  %v1776_v4 = vld [vmem:[#allocation7] ss:$16 sps:$4 sm:$0xff]   ;;  %v1778_v5 = vld [vmem:[#allocation7 + $0x8] ss:$16 sps:$4 sm:$0xff]   ;;  %284 = vmatprep.subr.bf16.mxu1 %v1773_v3  ;;  %v1781_v6 = vld [vmem:[#allocation7 + $0x24] ss:$16 sps:$4 sm:$0xff]  }
  0x2a   :  { %244 = vmatpush1.bf16.msra.mxu0 %v1776_v4  ;;  %285 = vmatpush1.bf16.msra.mxu1 %v1778_v5  ;;  %v1785_v7 = vld [vmem:[#allocation7 + $0x2c] ss:$16 sps:$4 sm:$0xff]   ;;  %v1787_v8 = vld [vmem:[#allocation7 + $0x20] ss:$16 sps:$4 sm:$0xff]   ;;  %v1790_v9 = vld [vmem:[#allocation7 + $0x28] ss:$16 sps:$4 sm:$0xff]  }
  0x2b   :  { %245 = vmatprep.subr.bf16.mxu0 %v1781_v6  ;;  %286 = vmatprep.subr.bf16.mxu1 %v1785_v7  ;;  %v1793_v10 = vld [vmem:[#allocation7 + $0x44] ss:$16 sps:$4 sm:$0xff]   ;;  %v1795_v11 = vld [vmem:[#allocation7 + $0x4c] ss:$16 sps:$4 sm:$0xff]   ;;  %v1797_v12 = vld [vmem:[#allocation7 + $0x40] ss:$16 sps:$4 sm:$0xff]  }
  0x2c   :  { %v1799_v13 = vld [vmem:[#allocation7 + $0x48] ss:$16 sps:$4 sm:$0xff]   ;;  %v1803_v14 = vld [vmem:[#allocation7 + $0x64] ss:$16 sps:$4 sm:$0xff]   ;;  %v1807_v15 = vld [vmem:[#allocation7 + $0x6c] ss:$16 sps:$4 sm:$0xff]  }
  0x2d   :  { %v1809_v16 = vld [vmem:[#allocation7 + $0x60] ss:$16 sps:$4 sm:$0xff]   ;;  %v1813_v17 = vld [vmem:[#allocation7 + $0x68] ss:$16 sps:$4 sm:$0xff]   ;;  %v1815_v18 = vld [vmem:[#allocation7 + $0x84] ss:$16 sps:$4 sm:$0xff]  }
  0x2e   :  { %246 = vmatpush1.bf16.msra.mxu0 %v1787_v8  ;;  %287 = vmatpush1.bf16.msra.mxu1 %v1790_v9  ;;  %v1819_v19 = vld [vmem:[#allocation7 + $0x8c] ss:$16 sps:$4 sm:$0xff]   ;;  %v1821_v20 = vld [vmem:[#allocation7 + $0x80] ss:$16 sps:$4 sm:$0xff]   ;;  %v1823_v21 = vld [vmem:[#allocation7 + $0x88] ss:$16 sps:$4 sm:$0xff]  }
  0x2f   :  { %247 = vmatprep.subr.bf16.mxu0 %v1793_v10  ;;  %288 = vmatprep.subr.bf16.mxu1 %v1795_v11  ;;  %v1827_v22 = vld [vmem:[#allocation7 + $0xa4] ss:$16 sps:$4 sm:$0xff]   ;;  %v1831_v23 = vld [vmem:[#allocation7 + $0xac] ss:$16 sps:$4 sm:$0xff]   ;;  %v1835_v24 = vld [vmem:[#allocation7 + $0xa0] ss:$16 sps:$4 sm:$0xff]  }
  0x30   :  { %v1837_v25 = vld [vmem:[#allocation7 + $0xa8] ss:$16 sps:$4 sm:$0xff]   ;;  %v1841_v26 = vld [vmem:[#allocation7 + $0xc4] ss:$16 sps:$4 sm:$0xff]   ;;  %v1843_v27 = vld [vmem:[#allocation7 + $0xcc] ss:$16 sps:$4 sm:$0xff]  }
  0x31   :  { %v1847_v28 = vld [vmem:[#allocation7 + $0xc0] ss:$16 sps:$4 sm:$0xff]   ;;  %v1849_v29 = vld [vmem:[#allocation7 + $0xc8] ss:$16 sps:$4 sm:$0xff]   ;;  %v1853_v30 = vld [vmem:[#allocation7 + $0xe4] ss:$16 sps:$4 sm:$0xff]  }
  0x32   :  { %248 = vmatpush1.bf16.msra.mxu0 %v1797_v12  ;;  %289 = vmatpush1.bf16.msra.mxu1 %v1799_v13  ;;  %v1855_v31 = vld [vmem:[#allocation7 + $0xec] ss:$16 sps:$4 sm:$0xff]   ;;  %v1859_v32 = vld [vmem:[#allocation7 + $0xe0] ss:$16 sps:$4 sm:$0xff]   ;;  %v1861_v33 = vld [vmem:[#allocation7 + $0xe8] ss:$16 sps:$4 sm:$0xff]  }
  0x33   :  { %249 = vmatprep.subr.bf16.mxu0 %v1803_v14  ;;  %290 = vmatprep.subr.bf16.mxu1 %v1807_v15  ;;  %v79_v34 = vld [vmem:[#allocation2] sm:$0x3]  ;;  %v1728_v36 = vmov 1983009808   ;;  %v335_v40 = vshrl.u32 %v334_v38, 7  ;;  %v81_v54 = vld [vmem:[#allocation4] sm:$0xff] }
  0x34   :  { %v82_v35 = vpack.c.bf16 %v79_v34, %v79_v34  ;;  %v332_v37 = vunpack.c.l.s4 %v1728_v36  ;;  %v80_v38 = vld [vmem:[#allocation3] sm:$0x3]  ;;  %s1729_s1 = smov [#allocation9]  }
  0x35   :  { %s1364_s8 = sshll.u32 %s1729_s1, 4  ;;  %s1365_s8 = int_to_ptr.vmem [resolvable:$true] %s1364_s8 }
  0x36   :  { %250 = vmatpush1.bf16.msra.mxu0 %v1809_v16  ;;  %291 = vmatpush1.bf16.msra.mxu1 %v1813_v17  ;;  %v333_v39 = vunpack.c.0.s8 %v332_v37  ;;  %s1692_s9 = scalar_lea.vmem %s1365_s8, 32  ;;  %p1697_p3 = scmp.lt.s32.totalorder %s1365_s8, %s1365_s8 }
  0x37   :  { %251 = vmatprep.subr.bf16.mxu0 %v1815_v18  ;;  %292 = vmatprep.subr.bf16.mxu1 %v1819_v19  ;;  %p1693_p2 = scmp.ne.s32.totalorder %s1365_s8, %s1692_s9  ;;  %p1698_p4 = scmp.lt.s32.totalorder %s1692_s9, %s1692_s9 }
  0x38   :  { %v1903_v43 = vsub.s32 %v333_v39, %v335_v40 }
  0x39   :  { %p1699_p5 = por %p1698_p4, %p1697_p3 }
  0x3a   :  { %252 = vmatpush1.bf16.msra.mxu0 %v1821_v20  ;;  %293 = vmatpush1.bf16.msra.mxu1 %v1823_v21 }
  0x3b   :  { %253 = vmatprep.subr.bf16.mxu0 %v1827_v22  ;;  %294 = vmatprep.subr.bf16.mxu1 %v1831_v23  ;;  %p1700_p6 = pnand %p1699_p5, %p1693_p2 }
  0x3e   :  { %254 = vmatpush1.bf16.msra.mxu0 %v1835_v24  ;;  %295 = vmatpush1.bf16.msra.mxu1 %v1837_v25 }
  0x3f   :  { %255 = vmatprep.subr.bf16.mxu0 %v1841_v26  ;;  %296 = vmatprep.subr.bf16.mxu1 %v1843_v27 }
  0x42   :  { %256 = vmatpush1.bf16.msra.mxu0 %v1847_v28  ;;  %297 = vmatpush1.bf16.msra.mxu1 %v1849_v29 }
  0x43   :  { %257 = vmatprep.subr.bf16.mxu0 %v1853_v30  ;;  %298 = vmatprep.subr.bf16.mxu1 %v1855_v31 }
  0x46   :  { %258 = vmatpush1.bf16.msra.mxu0 %v1859_v32  ;;  %299 = vmatpush1.bf16.msra.mxu1 %v1861_v33 }
  0x47   :  { %382 = vmatprep.subr.bf16.mxu0 %v1771_v2  ;;  %423 = vmatprep.subr.bf16.mxu1 %v1773_v3 }
  0x49   :  { %276 = vmatmul.mubr.bf16.vlgmr.msra.gmra.mrb[0].mxu0 %v82_v35  ;;  %317 = vmatmul.mubr.bf16.vlgmr.msra.gmra.mrb[0].mxu1 %v82_v35 }
  0x4a   :  { %383 = vmatpush1.bf16.msra.mxu0 %v1776_v4  ;;  %424 = vmatpush1.bf16.msra.mxu1 %v1778_v5 }
  0x4b   :  { %384 = vmatprep.subr.bf16.mxu0 %v1781_v6  ;;  %425 = vmatprep.subr.bf16.mxu1 %v1785_v7 }
  0x4c   :  { %414 = vmatprep.mubr.bf16.mxu0 %v1726_v0  ;;  %455 = vmatprep.mubr.bf16.mxu1 %v1726_v0 }
  0x4e   :  { %385 = vmatpush1.bf16.msra.mxu0 %v1787_v8  ;;  %426 = vmatpush1.bf16.msra.mxu1 %v1790_v9 }
  0x4f   :  { %386 = vmatprep.subr.bf16.mxu0 %v1793_v10  ;;  %427 = vmatprep.subr.bf16.mxu1 %v1795_v11 }
  0x52   :  { %387 = vmatpush1.bf16.msra.mxu0 %v1797_v12  ;;  %428 = vmatpush1.bf16.msra.mxu1 %v1799_v13 }
  0x53   :  { %388 = vmatprep.subr.bf16.mxu0 %v1803_v14  ;;  %429 = vmatprep.subr.bf16.mxu1 %v1807_v15 }
  0x56   :  { %389 = vmatpush1.bf16.msra.mxu0 %v1809_v16  ;;  %430 = vmatpush1.bf16.msra.mxu1 %v1813_v17 }
  0x57   :  { %390 = vmatprep.subr.bf16.mxu0 %v1815_v18  ;;  %431 = vmatprep.subr.bf16.mxu1 %v1819_v19 }
  0x5a   :  { %391 = vmatpush1.bf16.msra.mxu0 %v1821_v20  ;;  %432 = vmatpush1.bf16.msra.mxu1 %v1823_v21 }
  0x5b   :  { %392 = vmatprep.subr.bf16.mxu0 %v1827_v22  ;;  %433 = vmatprep.subr.bf16.mxu1 %v1831_v23 }
  0x5e   :  { %393 = vmatpush1.bf16.msra.mxu0 %v1835_v24  ;;  %434 = vmatpush1.bf16.msra.mxu1 %v1837_v25 }
  0x5f   :  { %394 = vmatprep.subr.bf16.mxu0 %v1841_v26  ;;  %435 = vmatprep.subr.bf16.mxu1 %v1843_v27 }
  0x62   :  { %395 = vmatpush1.bf16.msra.mxu0 %v1847_v28  ;;  %436 = vmatpush1.bf16.msra.mxu1 %v1849_v29 }
  0x63   :  { %396 = vmatprep.subr.bf16.mxu0 %v1853_v30  ;;  %437 = vmatprep.subr.bf16.mxu1 %v1855_v31 }
  0x66   :  { %397 = vmatpush1.bf16.msra.mxu0 %v1859_v32  ;;  %438 = vmatpush1.bf16.msra.mxu1 %v1861_v33 }
  0x67   :  { %521 = vmatprep.subr.bf16.mxu0 %v1771_v2  ;;  %562 = vmatprep.subr.bf16.mxu1 %v1773_v3 }
 0x11c   :  { %v277_v41 = vpop.f32.mrb[0].mxu0  ;;  %v318_v42 = vpop.f32.mrb[0].mxu1 }
 0x11d   :  { %v279_v44 = vpop.f32.mrb[1].mxu0  ;;  %v320_v45 = vpop.f32.mrb[1].mxu1 }
 0x11e   :  { %v329_v46 = vcombine.low %v277_v41, %v279_v44  ;;  %v330_v47 = vcombine.low %v318_v42, %v320_v45  ;;  %v281_v48 = vpop.f32.mrb[2].mxu0  ;;  %v322_v49 = vpop.f32.mrb[2].mxu1 }
 0x11f   :  { %v282_v50 = vpop.f32.mrb[3].mxu0  ;;  %v323_v51 = vpop.f32.mrb[3].mxu1 }
 0x120   :  { %v337_v52 = vrot.slane %v329_v46, %v1903_v43  ;;  %v344_v53 = vrot.slane %v330_v47, %v1903_v43 }
 0x122   :  { %v345_v55 = vcombine.low %v337_v52, %v344_v53 }
 0x124   :  { %v347_v56 = vadd.f32 %v345_v55, %v81_v54 }
 0x126   :  { %v1406_v57 = vmul.f32 -1.442695, %v347_v56  ;;  %v355_v58 = vrot.slane %v347_v56, 2  ;;  %v366_v60 = vrot.slane %v347_v56, 6  ;;  %v363_v63 = vrot.slane %v347_v56, 4 }
 0x128   :  { %1488 = vpow2.f32 %v1406_v57  ;;  %v1407_v59 = vmul.f32 -1.442695, %v355_v58  ;;  %v1408_v61 = vmul.f32 -1.442695, %v366_v60 }
 0x12a   :  { %1490 = vpow2.f32 %v1407_v59 }
 0x12b   :  { %1492 = vpow2.f32 %v1408_v61 }
 0x132   :  { %v1489_v62 = vpop.eup %1488 }
 0x133   :  { %v351_v1 = vadd.f32 1.0, %v1489_v62  ;;  %v380_v62 = vld [vmem:[#allocation4 + $0x8] sm:$0xff] }
 0x134   :  { %v1491_v34 = vpop.eup %1490 }
 0x135   :  { %1494 = vrcp.f32 %v351_v1  ;;  %v360_v35 = vadd.f32 1.0, %v1491_v34  ;;  %v1493_v36 = vpop.eup %1492 }
 0x136   :  { %1496 = vtanh.f32 %v363_v63  ;;  %v371_v41 = vadd.f32 1.0, %v1493_v36 }
 0x137   :  { %1498 = vrcp.f32 %v360_v35 }
 0x138   :  { %1500 = vrcp.f32 %v371_v41 }
 0x13f   :  { %v1495_v37 = vpop.eup %1494 }
 0x140   :  { %v1497_v39 = vpop.eup %1496 }
 0x141   :  { %v1499_v40 = vpop.eup %1498  ;;  %v375_v44 = vmul.f32 %v1497_v39, %v1495_v37 }
 0x142   :  { %v374_v42 = vmul.f32 %v1499_v40, %v80_v38  ;;  %v1501_v46 = vpop.eup %1500 }
 0x144   :  { %v1907_v45 = vadd.f32 %v375_v44, %v374_v42 }
 0x146   :  { %1502 = vtanh.f32 %v1907_v45 }
 0x150   :  { %v1503_v47 = vpop.eup %1502 }
 0x151   :  { %v378_v48 = vmul.f32 %v1503_v47, %v1501_v46 }
 0x153   :  { %v381_v49 = vpack.c.bf16 %v378_v48, %v378_v48 }
 0x155   :  { %415 = vmatmul.mubr.bf16.vlgmr.msra.gmra.mrb[4].mxu0 %v381_v49  ;;  %456 = vmatmul.mubr.bf16.vlgmr.msra.gmra.mrb[4].mxu1 %v381_v49 }
 0x156   :  { %522 = vmatpush1.bf16.msra.mxu0 %v1776_v4  ;;  %563 = vmatpush1.bf16.msra.mxu1 %v1778_v5 }
 0x157   :  { %523 = vmatprep.subr.bf16.mxu0 %v1781_v6  ;;  %564 = vmatprep.subr.bf16.mxu1 %v1785_v7 }
 0x158   :  { %553 = vmatprep.mubr.bf16.mxu0 %v1726_v0  ;;  %594 = vmatprep.mubr.bf16.mxu1 %v1726_v0 }
 0x15a   :  { %524 = vmatpush1.bf16.msra.mxu0 %v1787_v8  ;;  %565 = vmatpush1.bf16.msra.mxu1 %v1790_v9 }
 0x15b   :  { %525 = vmatprep.subr.bf16.mxu0 %v1793_v10  ;;  %566 = vmatprep.subr.bf16.mxu1 %v1795_v11 }
 0x15e   :  { %526 = vmatpush1.bf16.msra.mxu0 %v1797_v12  ;;  %567 = vmatpush1.bf16.msra.mxu1 %v1799_v13 }
 0x15f   :  { %527 = vmatprep.subr.bf16.mxu0 %v1803_v14  ;;  %568 = vmatprep.subr.bf16.mxu1 %v1807_v15 }
 0x162   :  { %528 = vmatpush1.bf16.msra.mxu0 %v1809_v16  ;;  %569 = vmatpush1.bf16.msra.mxu1 %v1813_v17 }
 0x163   :  { %529 = vmatprep.subr.bf16.mxu0 %v1815_v18  ;;  %570 = vmatprep.subr.bf16.mxu1 %v1819_v19 }
 0x166   :  { %530 = vmatpush1.bf16.msra.mxu0 %v1821_v20  ;;  %571 = vmatpush1.bf16.msra.mxu1 %v1823_v21 }
 0x167   :  { %531 = vmatprep.subr.bf16.mxu0 %v1827_v22  ;;  %572 = vmatprep.subr.bf16.mxu1 %v1831_v23 }
 0x16a   :  { %532 = vmatpush1.bf16.msra.mxu0 %v1835_v24  ;;  %573 = vmatpush1.bf16.msra.mxu1 %v1837_v25 }
 0x16b   :  { %533 = vmatprep.subr.bf16.mxu0 %v1841_v26  ;;  %574 = vmatprep.subr.bf16.mxu1 %v1843_v27 }
 0x16e   :  { %534 = vmatpush1.bf16.msra.mxu0 %v1847_v28  ;;  %575 = vmatpush1.bf16.msra.mxu1 %v1849_v29 }
 0x16f   :  { %535 = vmatprep.subr.bf16.mxu0 %v1853_v30  ;;  %576 = vmatprep.subr.bf16.mxu1 %v1855_v31 }
 0x172   :  { %536 = vmatpush1.bf16.msra.mxu0 %v1859_v32  ;;  %577 = vmatpush1.bf16.msra.mxu1 %v1861_v33 }
 0x173   :  { %660 = vmatprep.subr.bf16.mxu0 %v1771_v2  ;;  %701 = vmatprep.subr.bf16.mxu1 %v1773_v3 }
 0x228   :  { %v416_v50 = vpop.f32.mrb[4].mxu0  ;;  %v457_v51 = vpop.f32.mrb[4].mxu1 }
 0x229   :  { %v418_v52 = vpop.f32.mrb[5].mxu0  ;;  %v459_v53 = vpop.f32.mrb[5].mxu1 }
 0x22a   :  { %v468_v54 = vcombine.low %v416_v50, %v418_v52  ;;  %v469_v55 = vcombine.low %v457_v51, %v459_v53  ;;  %v420_v56 = vpop.f32.mrb[6].mxu0  ;;  %v461_v57 = vpop.f32.mrb[6].mxu1 }
 0x22b   :  { %v421_v58 = vpop.f32.mrb[7].mxu0  ;;  %v462_v59 = vpop.f32.mrb[7].mxu1 }
 0x22c   :  { %v476_v60 = vrot.slane %v468_v54, %v1903_v43  ;;  %v483_v61 = vrot.slane %v469_v55, %v1903_v43 }
 0x22e   :  { %v484_v63 = vcombine.low %v476_v60, %v483_v61 }
 0x230   :  { %v486_v1 = vadd.f32 %v484_v63, %v380_v62 }
 0x232   :  { %v1409_v34 = vmul.f32 -1.442695, %v486_v1  ;;  %v494_v35 = vrot.slane %v486_v1, 2  ;;  %v505_v37 = vrot.slane %v486_v1, 6  ;;  %v502_v40 = vrot.slane %v486_v1, 4 }
 0x234   :  { %1504 = vpow2.f32 %v1409_v34  ;;  %v1410_v36 = vmul.f32 -1.442695, %v494_v35  ;;  %v1411_v38 = vmul.f32 -1.442695, %v505_v37 }
 0x236   :  { %1506 = vpow2.f32 %v1410_v36 }
 0x237   :  { %1508 = vpow2.f32 %v1411_v38  ;;  %v519_v38 = vld [vmem:[#allocation4 + $0x10] sm:$0xff] }
 0x23e   :  { %v1505_v39 = vpop.eup %1504 }
 0x23f   :  { %v490_v41 = vadd.f32 1.0, %v1505_v39 }
 0x240   :  { %v1507_v42 = vpop.eup %1506 }
 0x241   :  { %1510 = vrcp.f32 %v490_v41  ;;  %v499_v44 = vadd.f32 1.0, %v1507_v42  ;;  %v1509_v46 = vpop.eup %1508 }
 0x242   :  { %1512 = vtanh.f32 %v502_v40  ;;  %v510_v50 = vadd.f32 1.0, %v1509_v46 }
 0x243   :  { %1514 = vrcp.f32 %v499_v44 }
 0x244   :  { %1516 = vrcp.f32 %v510_v50 }
 0x24b   :  { %v1511_v47 = vpop.eup %1510 }
 0x24c   :  { %v1513_v48 = vpop.eup %1512 }
 0x24d   :  { %v1515_v49 = vpop.eup %1514  ;;  %v514_v52 = vmul.f32 %v1513_v48, %v1511_v47 }
 0x24e   :  { %v513_v51 = vmul.f32 %v1515_v49, %v1907_v45  ;;  %v1517_v54 = vpop.eup %1516 }
 0x250   :  { %v1947_v53 = vadd.f32 %v514_v52, %v513_v51 }
 0x252   :  { %1518 = vtanh.f32 %v1947_v53 }
 0x25c   :  { %v1519_v55 = vpop.eup %1518 }
 0x25d   :  { %v517_v56 = vmul.f32 %v1519_v55, %v1517_v54 }
 0x25f   :  { %v520_v57 = vpack.c.bf16 %v517_v56, %v517_v56 }
 0x261   :  { %554 = vmatmul.mubr.bf16.vlgmr.msra.gmra.mrb[8].mxu0 %v520_v57  ;;  %595 = vmatmul.mubr.bf16.vlgmr.msra.gmra.mrb[8].mxu1 %v520_v57 }
 0x262   :  { %661 = vmatpush1.bf16.msra.mxu0 %v1776_v4  ;;  %702 = vmatpush1.bf16.msra.mxu1 %v1778_v5 }
 0x263   :  { %662 = vmatprep.subr.bf16.mxu0 %v1781_v6  ;;  %703 = vmatprep.subr.bf16.mxu1 %v1785_v7 }
 0x264   :  { %692 = vmatprep.mubr.bf16.mxu0 %v1726_v0  ;;  %733 = vmatprep.mubr.bf16.mxu1 %v1726_v0 }
 0x266   :  { %663 = vmatpush1.bf16.msra.mxu0 %v1787_v8  ;;  %704 = vmatpush1.bf16.msra.mxu1 %v1790_v9 }
 0x267   :  { %664 = vmatprep.subr.bf16.mxu0 %v1793_v10  ;;  %705 = vmatprep.subr.bf16.mxu1 %v1795_v11 }
 0x26a   :  { %665 = vmatpush1.bf16.msra.mxu0 %v1797_v12  ;;  %706 = vmatpush1.bf16.msra.mxu1 %v1799_v13 }
 0x26b   :  { %666 = vmatprep.subr.bf16.mxu0 %v1803_v14  ;;  %707 = vmatprep.subr.bf16.mxu1 %v1807_v15 }
 0x26e   :  { %667 = vmatpush1.bf16.msra.mxu0 %v1809_v16  ;;  %708 = vmatpush1.bf16.msra.mxu1 %v1813_v17 }
 0x26f   :  { %668 = vmatprep.subr.bf16.mxu0 %v1815_v18  ;;  %709 = vmatprep.subr.bf16.mxu1 %v1819_v19 }
 0x272   :  { %669 = vmatpush1.bf16.msra.mxu0 %v1821_v20  ;;  %710 = vmatpush1.bf16.msra.mxu1 %v1823_v21 }
 0x273   :  { %670 = vmatprep.subr.bf16.mxu0 %v1827_v22  ;;  %711 = vmatprep.subr.bf16.mxu1 %v1831_v23 }
 0x276   :  { %671 = vmatpush1.bf16.msra.mxu0 %v1835_v24  ;;  %712 = vmatpush1.bf16.msra.mxu1 %v1837_v25 }
 0x277   :  { %672 = vmatprep.subr.bf16.mxu0 %v1841_v26  ;;  %713 = vmatprep.subr.bf16.mxu1 %v1843_v27 }
 0x27a   :  { %673 = vmatpush1.bf16.msra.mxu0 %v1847_v28  ;;  %714 = vmatpush1.bf16.msra.mxu1 %v1849_v29 }
 0x27b   :  { %674 = vmatprep.subr.bf16.mxu0 %v1853_v30  ;;  %715 = vmatprep.subr.bf16.mxu1 %v1855_v31 }
 0x27e   :  { %675 = vmatpush1.bf16.msra.mxu0 %v1859_v32  ;;  %716 = vmatpush1.bf16.msra.mxu1 %v1861_v33 }
 0x27f   :  { %799 = vmatprep.subr.bf16.mxu0 %v1771_v2  ;;  %840 = vmatprep.subr.bf16.mxu1 %v1773_v3 }
 0x334   :  { %v555_v45 = vpop.f32.mrb[8].mxu0  ;;  %v596_v58 = vpop.f32.mrb[8].mxu1 }
 0x335   :  { %v557_v59 = vpop.f32.mrb[9].mxu0  ;;  %v598_v60 = vpop.f32.mrb[9].mxu1 }
 0x336   :  { %v607_v61 = vcombine.low %v555_v45, %v557_v59  ;;  %v608_v62 = vcombine.low %v596_v58, %v598_v60  ;;  %v559_v63 = vpop.f32.mrb[10].mxu0  ;;  %v600_v1 = vpop.f32.mrb[10].mxu1 }
 0x337   :  { %v560_v34 = vpop.f32.mrb[11].mxu0  ;;  %v601_v35 = vpop.f32.mrb[11].mxu1 }
 0x338   :  { %v615_v36 = vrot.slane %v607_v61, %v1903_v43  ;;  %v622_v37 = vrot.slane %v608_v62, %v1903_v43 }
 0x33a   :  { %v623_v39 = vcombine.low %v615_v36, %v622_v37 }
 0x33c   :  { %v625_v40 = vadd.f32 %v623_v39, %v519_v38 }
 0x33e   :  { %v1412_v41 = vmul.f32 -1.442695, %v625_v40  ;;  %v633_v42 = vrot.slane %v625_v40, 2  ;;  %v644_v46 = vrot.slane %v625_v40, 6  ;;  %v641_v49 = vrot.slane %v625_v40, 4 }
 0x340   :  { %1520 = vpow2.f32 %v1412_v41  ;;  %v1413_v44 = vmul.f32 -1.442695, %v633_v42  ;;  %v1414_v47 = vmul.f32 -1.442695, %v644_v46 }
 0x342   :  { %1522 = vpow2.f32 %v1413_v44 }
 0x343   :  { %1524 = vpow2.f32 %v1414_v47  ;;  %v658_v47 = vld [vmem:[#allocation4 + $0x18] sm:$0xff] }
 0x34a   :  { %v1521_v48 = vpop.eup %1520 }
 0x34b   :  { %v629_v50 = vadd.f32 1.0, %v1521_v48 }
 0x34c   :  { %v1523_v51 = vpop.eup %1522 }
 0x34d   :  { %1526 = vrcp.f32 %v629_v50  ;;  %v638_v52 = vadd.f32 1.0, %v1523_v51  ;;  %v1525_v54 = vpop.eup %1524 }
 0x34e   :  { %1528 = vtanh.f32 %v641_v49  ;;  %v649_v45 = vadd.f32 1.0, %v1525_v54 }
 0x34f   :  { %1530 = vrcp.f32 %v638_v52 }
 0x350   :  { %1532 = vrcp.f32 %v649_v45 }
 0x357   :  { %v1527_v55 = vpop.eup %1526 }
 0x358   :  { %v1529_v56 = vpop.eup %1528 }
 0x359   :  { %v1531_v57 = vpop.eup %1530  ;;  %v653_v59 = vmul.f32 %v1529_v56, %v1527_v55 }
 0x35a   :  { %v652_v58 = vmul.f32 %v1531_v57, %v1947_v53  ;;  %v1533_v61 = vpop.eup %1532 }
 0x35c   :  { %v1987_v60 = vadd.f32 %v653_v59, %v652_v58 }
 0x35e   :  { %1534 = vtanh.f32 %v1987_v60 }
 0x368   :  { %v1535_v62 = vpop.eup %1534 }
 0x369   :  { %v656_v63 = vmul.f32 %v1535_v62, %v1533_v61 }
 0x36b   :  { %v659_v1 = vpack.c.bf16 %v656_v63, %v656_v63 }
 0x36d   :  { %693 = vmatmul.mubr.bf16.vlgmr.msra.gmra.mrb[12].mxu0 %v659_v1  ;;  %734 = vmatmul.mubr.bf16.vlgmr.msra.gmra.mrb[12].mxu1 %v659_v1 }
 0x36e   :  { %800 = vmatpush1.bf16.msra.mxu0 %v1776_v4  ;;  %841 = vmatpush1.bf16.msra.mxu1 %v1778_v5 }
 0x36f   :  { %801 = vmatprep.subr.bf16.mxu0 %v1781_v6  ;;  %842 = vmatprep.subr.bf16.mxu1 %v1785_v7 }
 0x370   :  { %831 = vmatprep.mubr.bf16.mxu0 %v1726_v0  ;;  %872 = vmatprep.mubr.bf16.mxu1 %v1726_v0 }
 0x372   :  { %802 = vmatpush1.bf16.msra.mxu0 %v1787_v8  ;;  %843 = vmatpush1.bf16.msra.mxu1 %v1790_v9 }
 0x373   :  { %803 = vmatprep.subr.bf16.mxu0 %v1793_v10  ;;  %844 = vmatprep.subr.bf16.mxu1 %v1795_v11 }
 0x376   :  { %804 = vmatpush1.bf16.msra.mxu0 %v1797_v12  ;;  %845 = vmatpush1.bf16.msra.mxu1 %v1799_v13 }
 0x377   :  { %805 = vmatprep.subr.bf16.mxu0 %v1803_v14  ;;  %846 = vmatprep.subr.bf16.mxu1 %v1807_v15 }
 0x37a   :  { %806 = vmatpush1.bf16.msra.mxu0 %v1809_v16  ;;  %847 = vmatpush1.bf16.msra.mxu1 %v1813_v17 }
 0x37b   :  { %807 = vmatprep.subr.bf16.mxu0 %v1815_v18  ;;  %848 = vmatprep.subr.bf16.mxu1 %v1819_v19 }
 0x37e   :  { %808 = vmatpush1.bf16.msra.mxu0 %v1821_v20  ;;  %849 = vmatpush1.bf16.msra.mxu1 %v1823_v21 }
 0x37f   :  { %809 = vmatprep.subr.bf16.mxu0 %v1827_v22  ;;  %850 = vmatprep.subr.bf16.mxu1 %v1831_v23 }
 0x382   :  { %810 = vmatpush1.bf16.msra.mxu0 %v1835_v24  ;;  %851 = vmatpush1.bf16.msra.mxu1 %v1837_v25 }
 0x383   :  { %811 = vmatprep.subr.bf16.mxu0 %v1841_v26  ;;  %852 = vmatprep.subr.bf16.mxu1 %v1843_v27 }
 0x386   :  { %812 = vmatpush1.bf16.msra.mxu0 %v1847_v28  ;;  %853 = vmatpush1.bf16.msra.mxu1 %v1849_v29 }
 0x387   :  { %813 = vmatprep.subr.bf16.mxu0 %v1853_v30  ;;  %854 = vmatprep.subr.bf16.mxu1 %v1855_v31 }
 0x38a   :  { %814 = vmatpush1.bf16.msra.mxu0 %v1859_v32  ;;  %855 = vmatpush1.bf16.msra.mxu1 %v1861_v33 }
 0x38b   :  { %938 = vmatprep.subr.bf16.mxu0 %v1771_v2  ;;  %979 = vmatprep.subr.bf16.mxu1 %v1773_v3 }
 0x440   :  { %v694_v53 = vpop.f32.mrb[12].mxu0  ;;  %v735_v34 = vpop.f32.mrb[12].mxu1 }
 0x441   :  { %v696_v35 = vpop.f32.mrb[13].mxu0  ;;  %v737_v36 = vpop.f32.mrb[13].mxu1 }
 0x442   :  { %v746_v37 = vcombine.low %v694_v53, %v696_v35  ;;  %v747_v38 = vcombine.low %v735_v34, %v737_v36  ;;  %v698_v39 = vpop.f32.mrb[14].mxu0  ;;  %v739_v40 = vpop.f32.mrb[14].mxu1 }
 0x443   :  { %v699_v41 = vpop.f32.mrb[15].mxu0  ;;  %v740_v42 = vpop.f32.mrb[15].mxu1 }
 0x444   :  { %v754_v44 = vrot.slane %v746_v37, %v1903_v43  ;;  %v761_v46 = vrot.slane %v747_v38, %v1903_v43 }
 0x446   :  { %v762_v48 = vcombine.low %v754_v44, %v761_v46 }
 0x448   :  { %v764_v49 = vadd.f32 %v762_v48, %v658_v47 }
 0x44a   :  { %v1415_v50 = vmul.f32 -1.442695, %v764_v49  ;;  %v772_v51 = vrot.slane %v764_v49, 2  ;;  %v783_v54 = vrot.slane %v764_v49, 6  ;;  %v780_v57 = vrot.slane %v764_v49, 4 }
 0x44c   :  { %1536 = vpow2.f32 %v1415_v50  ;;  %v1416_v52 = vmul.f32 -1.442695, %v772_v51  ;;  %v1417_v55 = vmul.f32 -1.442695, %v783_v54 }
 0x44e   :  { %1538 = vpow2.f32 %v1416_v52 }
 0x44f   :  { %1540 = vpow2.f32 %v1417_v55  ;;  %v797_v55 = vld [vmem:[#allocation4 + $0x20] sm:$0xff] }
 0x456   :  { %v1537_v56 = vpop.eup %1536 }
 0x457   :  { %v768_v45 = vadd.f32 1.0, %v1537_v56 }
 0x458   :  { %v1539_v58 = vpop.eup %1538 }
 0x459   :  { %1542 = vrcp.f32 %v768_v45  ;;  %v777_v59 = vadd.f32 1.0, %v1539_v58  ;;  %v1541_v61 = vpop.eup %1540 }
 0x45a   :  { %1544 = vtanh.f32 %v780_v57  ;;  %v788_v53 = vadd.f32 1.0, %v1541_v61 }
 0x45b   :  { %1546 = vrcp.f32 %v777_v59 }
 0x45c   :  { %1548 = vrcp.f32 %v788_v53 }
 0x463   :  { %v1543_v62 = vpop.eup %1542 }
 0x464   :  { %v1545_v63 = vpop.eup %1544 }
 0x465   :  { %v1547_v1 = vpop.eup %1546  ;;  %v792_v35 = vmul.f32 %v1545_v63, %v1543_v62 }
 0x466   :  { %v791_v34 = vmul.f32 %v1547_v1, %v1987_v60  ;;  %v1549_v37 = vpop.eup %1548 }
 0x468   :  { %v2027_v36 = vadd.f32 %v792_v35, %v791_v34 }
 0x46a   :  { %1550 = vtanh.f32 %v2027_v36 }
 0x474   :  { %v1551_v38 = vpop.eup %1550 }
 0x475   :  { %v795_v39 = vmul.f32 %v1551_v38, %v1549_v37 }
 0x477   :  { %v798_v40 = vpack.c.bf16 %v795_v39, %v795_v39 }
 0x479   :  { %832 = vmatmul.mubr.bf16.vlgmr.msra.gmra.mrb[16].mxu0 %v798_v40  ;;  %873 = vmatmul.mubr.bf16.vlgmr.msra.gmra.mrb[16].mxu1 %v798_v40 }
 0x47a   :  { %939 = vmatpush1.bf16.msra.mxu0 %v1776_v4  ;;  %980 = vmatpush1.bf16.msra.mxu1 %v1778_v5 }
 0x47b   :  { %940 = vmatprep.subr.bf16.mxu0 %v1781_v6  ;;  %981 = vmatprep.subr.bf16.mxu1 %v1785_v7 }
 0x47c   :  { %970 = vmatprep.mubr.bf16.mxu0 %v1726_v0  ;;  %1011 = vmatprep.mubr.bf16.mxu1 %v1726_v0 }
 0x47e   :  { %941 = vmatpush1.bf16.msra.mxu0 %v1787_v8  ;;  %982 = vmatpush1.bf16.msra.mxu1 %v1790_v9 }
 0x47f   :  { %942 = vmatprep.subr.bf16.mxu0 %v1793_v10  ;;  %983 = vmatprep.subr.bf16.mxu1 %v1795_v11 }
 0x482   :  { %943 = vmatpush1.bf16.msra.mxu0 %v1797_v12  ;;  %984 = vmatpush1.bf16.msra.mxu1 %v1799_v13 }
 0x483   :  { %944 = vmatprep.subr.bf16.mxu0 %v1803_v14  ;;  %985 = vmatprep.subr.bf16.mxu1 %v1807_v15 }
 0x486   :  { %945 = vmatpush1.bf16.msra.mxu0 %v1809_v16  ;;  %986 = vmatpush1.bf16.msra.mxu1 %v1813_v17 }
 0x487   :  { %946 = vmatprep.subr.bf16.mxu0 %v1815_v18  ;;  %987 = vmatprep.subr.bf16.mxu1 %v1819_v19 }
 0x48a   :  { %947 = vmatpush1.bf16.msra.mxu0 %v1821_v20  ;;  %988 = vmatpush1.bf16.msra.mxu1 %v1823_v21 }
 0x48b   :  { %948 = vmatprep.subr.bf16.mxu0 %v1827_v22  ;;  %989 = vmatprep.subr.bf16.mxu1 %v1831_v23 }
 0x48e   :  { %949 = vmatpush1.bf16.msra.mxu0 %v1835_v24  ;;  %990 = vmatpush1.bf16.msra.mxu1 %v1837_v25 }
 0x48f   :  { %950 = vmatprep.subr.bf16.mxu0 %v1841_v26  ;;  %991 = vmatprep.subr.bf16.mxu1 %v1843_v27 }
 0x492   :  { %951 = vmatpush1.bf16.msra.mxu0 %v1847_v28  ;;  %992 = vmatpush1.bf16.msra.mxu1 %v1849_v29 }
 0x493   :  { %952 = vmatprep.subr.bf16.mxu0 %v1853_v30  ;;  %993 = vmatprep.subr.bf16.mxu1 %v1855_v31 }
 0x496   :  { %953 = vmatpush1.bf16.msra.mxu0 %v1859_v32  ;;  %994 = vmatpush1.bf16.msra.mxu1 %v1861_v33 }
 0x497   :  { %1077 = vmatprep.subr.bf16.mxu0 %v1771_v2  ;;  %1118 = vmatprep.subr.bf16.mxu1 %v1773_v3 }
 0x54c   :  { %v833_v60 = vpop.f32.mrb[16].mxu0  ;;  %v874_v41 = vpop.f32.mrb[16].mxu1 }
 0x54d   :  { %v835_v42 = vpop.f32.mrb[17].mxu0  ;;  %v876_v44 = vpop.f32.mrb[17].mxu1 }
 0x54e   :  { %v885_v46 = vcombine.low %v833_v60, %v835_v42  ;;  %v886_v47 = vcombine.low %v874_v41, %v876_v44  ;;  %v837_v48 = vpop.f32.mrb[18].mxu0  ;;  %v878_v49 = vpop.f32.mrb[18].mxu1 }
 0x54f   :  { %v838_v50 = vpop.f32.mrb[19].mxu0  ;;  %v879_v51 = vpop.f32.mrb[19].mxu1 }
 0x550   :  { %v893_v52 = vrot.slane %v885_v46, %v1903_v43  ;;  %v900_v54 = vrot.slane %v886_v47, %v1903_v43 }
 0x552   :  { %v901_v56 = vcombine.low %v893_v52, %v900_v54 }
 0x554   :  { %v903_v57 = vadd.f32 %v901_v56, %v797_v55 }
 0x556   :  { %v1418_v2 = vmul.f32 -1.442695, %v903_v57  ;;  %v911_v45 = vrot.slane %v903_v57, 2  ;;  %v922_v58 = vrot.slane %v903_v57, 6  ;;  %v919_v62 = vrot.slane %v903_v57, 4 }
 0x557   :  { %v1618_v57 = vld [vmem:[#allocation7] ss:$16 sps:$4 sm:$0xff]  }
 0x558   :  { %1552 = vpow2.f32 %v1418_v2  ;;  %v1419_v3 = vmul.f32 -1.442695, %v911_v45  ;;  %v1420_v59 = vmul.f32 -1.442695, %v922_v58  ;;  %v1619_v2 = vld [vmem:[#allocation7 + $0x8] ss:$16 sps:$4 sm:$0xff]  }
 0x559   :  { %v1620_v45 = vld [vmem:[#allocation7 + $0x24] ss:$16 sps:$4 sm:$0xff]   ;;  %v1622_v58 = vld [vmem:[#allocation7 + $0x20] ss:$16 sps:$4 sm:$0xff]  }
 0x55a   :  { %1554 = vpow2.f32 %v1419_v3  ;;  %v1621_v3 = vld [vmem:[#allocation7 + $0x2c] ss:$16 sps:$4 sm:$0xff]  }
 0x55b   :  { %1556 = vpow2.f32 %v1420_v59  ;;  %v1623_v59 = vld [vmem:[#allocation7 + $0x28] ss:$16 sps:$4 sm:$0xff]  }
 0x562   :  { %v1553_v61 = vpop.eup %1552 }
 0x563   :  { %v907_v63 = vadd.f32 1.0, %v1553_v61  ;;  %v1624_v61 = vld [vmem:[#allocation7 + $0x44] ss:$16 sps:$4 sm:$0xff]  }
 0x564   :  { %v1555_v1 = vpop.eup %1554 }
 0x565   :  { %1558 = vrcp.f32 %v907_v63  ;;  %v916_v53 = vadd.f32 1.0, %v1555_v1  ;;  %v1557_v34 = vpop.eup %1556  ;;  %v1626_v63 = vld [vmem:[#allocation7 + $0x40] ss:$16 sps:$4 sm:$0xff]   ;;  %v1627_v1 = vld [vmem:[#allocation7 + $0x48] ss:$16 sps:$4 sm:$0xff]  }
 0x566   :  { %1560 = vtanh.f32 %v919_v62  ;;  %v927_v39 = vadd.f32 1.0, %v1557_v34  ;;  %v1625_v62 = vld [vmem:[#allocation7 + $0x4c] ss:$16 sps:$4 sm:$0xff]  }
 0x567   :  { %1562 = vrcp.f32 %v916_v53  ;;  %v1628_v53 = vld [vmem:[#allocation7 + $0x64] ss:$16 sps:$4 sm:$0xff]   ;;  %v1629_v34 = vld [vmem:[#allocation7 + $0x6c] ss:$16 sps:$4 sm:$0xff]  }
 0x568   :  { %1564 = vrcp.f32 %v927_v39  ;;  %v1634_v39 = vld [vmem:[#allocation7 + $0x80] ss:$16 sps:$4 sm:$0xff]  }
 0x56f   :  { %v1559_v35 = vpop.eup %1558 }
 0x570   :  { %v1561_v37 = vpop.eup %1560 }
 0x571   :  { %v1563_v38 = vpop.eup %1562  ;;  %v931_v60 = vmul.f32 %v1561_v37, %v1559_v35  ;;  %v1630_v35 = vld [vmem:[#allocation7 + $0x60] ss:$16 sps:$4 sm:$0xff]   ;;  %v1631_v37 = vld [vmem:[#allocation7 + $0x68] ss:$16 sps:$4 sm:$0xff]  }
 0x572   :  { %v930_v40 = vmul.f32 %v1563_v38, %v2027_v36  ;;  %v1565_v42 = vpop.eup %1564  ;;  %v1633_v38 = vld [vmem:[#allocation7 + $0x8c] ss:$16 sps:$4 sm:$0xff]  }
 0x574   :  { %v2067_v41 = vadd.f32 %v931_v60, %v930_v40  ;;  %v1635_v40 = vld [vmem:[#allocation7 + $0x88] ss:$16 sps:$4 sm:$0xff]   ;;  %v1636_v60 = vld [vmem:[#allocation7 + $0xa4] ss:$16 sps:$4 sm:$0xff]  }
 0x576   :  { %1566 = vtanh.f32 %v2067_v41 }
 0x580   :  { %v1567_v44 = vpop.eup %1566 }
 0x581   :  { %v934_v46 = vmul.f32 %v1567_v44, %v1565_v42  ;;  %v1638_v42 = vld [vmem:[#allocation7 + $0xa0] ss:$16 sps:$4 sm:$0xff]   ;;  %v1639_v44 = vld [vmem:[#allocation7 + $0xa8] ss:$16 sps:$4 sm:$0xff]  }
 0x583   :  { %v937_v47 = vpack.c.bf16 %v934_v46, %v934_v46  ;;  %v1640_v46 = vld [vmem:[#allocation7 + $0xc4] ss:$16 sps:$4 sm:$0xff]  }
 0x585   :  { %971 = vmatmul.mubr.bf16.vlgmr.msra.gmra.mrb[20].mxu0 %v937_v47  ;;  %1012 = vmatmul.mubr.bf16.vlgmr.msra.gmra.mrb[20].mxu1 %v937_v47  ;;  %v1641_v47 = vld [vmem:[#allocation7 + $0xcc] ss:$16 sps:$4 sm:$0xff]  }
 0x586   :  { %1078 = vmatpush1.bf16.msra.mxu0 %v1776_v4  ;;  %1119 = vmatpush1.bf16.msra.mxu1 %v1778_v5  ;;  %v1616_v4 = vld [vmem:[#allocation7 + $0x4] ss:$16 sps:$4 sm:$0xff]   ;;  %v1617_v5 = vld [vmem:[#allocation7 + $0xc] ss:$16 sps:$4 sm:$0xff]  }
 0x587   :  { %1079 = vmatprep.subr.bf16.mxu0 %v1781_v6  ;;  %1120 = vmatprep.subr.bf16.mxu1 %v1785_v7 }
 0x588   :  { %1109 = vmatprep.mubr.bf16.mxu0 %v1726_v0  ;;  %1150 = vmatprep.mubr.bf16.mxu1 %v1726_v0 }
 0x58a   :  { %1080 = vmatpush1.bf16.msra.mxu0 %v1787_v8  ;;  %1121 = vmatpush1.bf16.msra.mxu1 %v1790_v9 }
 0x58b   :  { %1081 = vmatprep.subr.bf16.mxu0 %v1793_v10  ;;  %1122 = vmatprep.subr.bf16.mxu1 %v1795_v11 }
 0x58e   :  { %1082 = vmatpush1.bf16.msra.mxu0 %v1797_v12  ;;  %1123 = vmatpush1.bf16.msra.mxu1 %v1799_v13 }
 0x58f   :  { %1083 = vmatprep.subr.bf16.mxu0 %v1803_v14  ;;  %1124 = vmatprep.subr.bf16.mxu1 %v1807_v15 }
 0x592   :  { %1084 = vmatpush1.bf16.msra.mxu0 %v1809_v16  ;;  %1125 = vmatpush1.bf16.msra.mxu1 %v1813_v17 }
 0x593   :  { %1085 = vmatprep.subr.bf16.mxu0 %v1815_v18  ;;  %1126 = vmatprep.subr.bf16.mxu1 %v1819_v19  ;;  %v936_v18 = vld [vmem:[#allocation4 + $0x28] sm:$0xff] }
 0x596   :  { %1086 = vmatpush1.bf16.msra.mxu0 %v1821_v20  ;;  %1127 = vmatpush1.bf16.msra.mxu1 %v1823_v21 }
 0x597   :  { %1087 = vmatprep.subr.bf16.mxu0 %v1827_v22  ;;  %1128 = vmatprep.subr.bf16.mxu1 %v1831_v23 }
 0x59a   :  { %1088 = vmatpush1.bf16.msra.mxu0 %v1835_v24  ;;  %1129 = vmatpush1.bf16.msra.mxu1 %v1837_v25 }
 0x59b   :  { %1089 = vmatprep.subr.bf16.mxu0 %v1841_v26  ;;  %1130 = vmatprep.subr.bf16.mxu1 %v1843_v27 }
 0x59e   :  { %1090 = vmatpush1.bf16.msra.mxu0 %v1847_v28  ;;  %1131 = vmatpush1.bf16.msra.mxu1 %v1849_v29 }
 0x59f   :  { %1091 = vmatprep.subr.bf16.mxu0 %v1853_v30  ;;  %1132 = vmatprep.subr.bf16.mxu1 %v1855_v31 }
 0x5a2   :  { %1092 = vmatpush1.bf16.msra.mxu0 %v1859_v32  ;;  %1133 = vmatpush1.bf16.msra.mxu1 %v1861_v33 }
 0x5a3   :  { %1216 = vmatprep.subr.bf16.mxu0 %v1616_v4  ;;  %1257 = vmatprep.subr.bf16.mxu1 %v1617_v5  ;;  %v1642_v4 = vld [vmem:[#allocation7 + $0xc0] ss:$16 sps:$4 sm:$0xff]   ;;  %v1643_v5 = vld [vmem:[#allocation7 + $0xc8] ss:$16 sps:$4 sm:$0xff]  }
 0x658   :  { %v972_v6 = vpop.f32.mrb[20].mxu0  ;;  %v1013_v7 = vpop.f32.mrb[20].mxu1 }
 0x659   :  { %v974_v8 = vpop.f32.mrb[21].mxu0  ;;  %v1015_v9 = vpop.f32.mrb[21].mxu1 }
 0x65a   :  { %v1024_v10 = vcombine.low %v972_v6, %v974_v8  ;;  %v1025_v11 = vcombine.low %v1013_v7, %v1015_v9  ;;  %v976_v12 = vpop.f32.mrb[22].mxu0  ;;  %v1017_v13 = vpop.f32.mrb[22].mxu1  ;;  %v1644_v6 = vld [vmem:[#allocation7 + $0xe4] ss:$16 sps:$4 sm:$0xff]   ;;  %v1645_v7 = vld [vmem:[#allocation7 + $0xec] ss:$16 sps:$4 sm:$0xff]  }
 0x65b   :  { %v977_v14 = vpop.f32.mrb[23].mxu0  ;;  %v1018_v15 = vpop.f32.mrb[23].mxu1  ;;  %v1646_v8 = vld [vmem:[#allocation7 + $0xe0] ss:$16 sps:$4 sm:$0xff]   ;;  %v1647_v9 = vld [vmem:[#allocation7 + $0xe8] ss:$16 sps:$4 sm:$0xff]  }
 0x65c   :  { %v1032_v16 = vrot.slane %v1024_v10, %v1903_v43  ;;  %v1039_v17 = vrot.slane %v1025_v11, %v1903_v43 }
 0x65e   :  { %v1040_v19 = vcombine.low %v1032_v16, %v1039_v17 }
 0x660   :  { %v1042_v20 = vadd.f32 %v1040_v19, %v936_v18 }
 0x662   :  { %v1421_v21 = vmul.f32 -1.442695, %v1042_v20  ;;  %v1050_v22 = vrot.slane %v1042_v20, 2  ;;  %v1061_v24 = vrot.slane %v1042_v20, 6  ;;  %v1058_v27 = vrot.slane %v1042_v20, 4 }
 0x664   :  { %1568 = vpow2.f32 %v1421_v21  ;;  %v1422_v23 = vmul.f32 -1.442695, %v1050_v22  ;;  %v1423_v25 = vmul.f32 -1.442695, %v1061_v24  ;;  %v1075_v22 = vld [vmem:[#allocation4 + $0x30] sm:$0xff] }
 0x666   :  { %1570 = vpow2.f32 %v1422_v23 }
 0x667   :  { %1572 = vpow2.f32 %v1423_v25 }
 0x66e   :  { %v1569_v26 = vpop.eup %1568 }
 0x66f   :  { %v1046_v28 = vadd.f32 1.0, %v1569_v26 }
 0x670   :  { %v1571_v29 = vpop.eup %1570 }
 0x671   :  { %1574 = vrcp.f32 %v1046_v28  ;;  %v1055_v30 = vadd.f32 1.0, %v1571_v29  ;;  %v1573_v31 = vpop.eup %1572 }
 0x672   :  { %1576 = vtanh.f32 %v1058_v27  ;;  %v1066_v48 = vadd.f32 1.0, %v1573_v31 }
 0x673   :  { %1578 = vrcp.f32 %v1055_v30 }
 0x674   :  { %1580 = vrcp.f32 %v1066_v48 }
 0x67b   :  { %v1575_v32 = vpop.eup %1574 }
 0x67c   :  { %v1577_v33 = vpop.eup %1576 }
 0x67d   :  { %v1579_v36 = vpop.eup %1578  ;;  %v1070_v50 = vmul.f32 %v1577_v33, %v1575_v32 }
 0x67e   :  { %v1069_v49 = vmul.f32 %v1579_v36, %v2067_v41  ;;  %v1581_v52 = vpop.eup %1580  ;;  %v1637_v41 = vld [vmem:[#allocation7 + $0xac] ss:$16 sps:$4 sm:$0xff]  }
 0x680   :  { %v2105_v51 = vadd.f32 %v1070_v50, %v1069_v49 }
 0x682   :  { %1582 = vtanh.f32 %v2105_v51 }
 0x68c   :  { %v1583_v54 = vpop.eup %1582 }
 0x68d   :  { %v1073_v55 = vmul.f32 %v1583_v54, %v1581_v52 }
 0x68f   :  { %v1076_v56 = vpack.c.bf16 %v1073_v55, %v1073_v55 }
 0x691   :  { %1110 = vmatmul.mubr.bf16.vlgmr.msra.gmra.mrb[24].mxu0 %v1076_v56  ;;  %1151 = vmatmul.mubr.bf16.vlgmr.msra.gmra.mrb[24].mxu1 %v1076_v56 }
 0x692   :  { %1217 = vmatpush1.bf16.msra.mxu0 %v1618_v57  ;;  %1258 = vmatpush1.bf16.msra.mxu1 %v1619_v2 }
 0x693   :  { %1218 = vmatprep.subr.bf16.mxu0 %v1620_v45  ;;  %1259 = vmatprep.subr.bf16.mxu1 %v1621_v3 }
 0x694   :  { %1248 = vmatprep.mubr.bf16.mxu0 %v1726_v0  ;;  %1289 = vmatprep.mubr.bf16.mxu1 %v1726_v0  ;;  %v1632_v0 = vld [vmem:[#allocation7 + $0x84] ss:$16 sps:$4 sm:$0xff]  }
 0x696   :  { %1219 = vmatpush1.bf16.msra.mxu0 %v1622_v58  ;;  %1260 = vmatpush1.bf16.msra.mxu1 %v1623_v59 }
 0x697   :  { %1220 = vmatprep.subr.bf16.mxu0 %v1624_v61  ;;  %1261 = vmatprep.subr.bf16.mxu1 %v1625_v62 }
 0x69a   :  { %1221 = vmatpush1.bf16.msra.mxu0 %v1626_v63  ;;  %1262 = vmatpush1.bf16.msra.mxu1 %v1627_v1 }
 0x69b   :  { %1222 = vmatprep.subr.bf16.mxu0 %v1628_v53  ;;  %1263 = vmatprep.subr.bf16.mxu1 %v1629_v34 }
 0x69e   :  { %1223 = vmatpush1.bf16.msra.mxu0 %v1630_v35  ;;  %1264 = vmatpush1.bf16.msra.mxu1 %v1631_v37 }
 0x69f   :  { %1224 = vmatprep.subr.bf16.mxu0 %v1632_v0  ;;  %1265 = vmatprep.subr.bf16.mxu1 %v1633_v38 }
 0x6a2   :  { %1225 = vmatpush1.bf16.msra.mxu0 %v1634_v39  ;;  %1266 = vmatpush1.bf16.msra.mxu1 %v1635_v40  ;;  %v1214_v39 = vld [vmem:[#allocation4 + $0x38] sm:$0xff] }
 0x6a3   :  { %1226 = vmatprep.subr.bf16.mxu0 %v1636_v60  ;;  %1267 = vmatprep.subr.bf16.mxu1 %v1637_v41 }
 0x6a6   :  { %1227 = vmatpush1.bf16.msra.mxu0 %v1638_v42  ;;  %1268 = vmatpush1.bf16.msra.mxu1 %v1639_v44 }
 0x6a7   :  { %1228 = vmatprep.subr.bf16.mxu0 %v1640_v46  ;;  %1269 = vmatprep.subr.bf16.mxu1 %v1641_v47 }
 0x6aa   :  { %1229 = vmatpush1.bf16.msra.mxu0 %v1642_v4  ;;  %1270 = vmatpush1.bf16.msra.mxu1 %v1643_v5 }
 0x6ab   :  { %1230 = vmatprep.subr.bf16.mxu0 %v1644_v6  ;;  %1271 = vmatprep.subr.bf16.mxu1 %v1645_v7 }
 0x6ae   :  { %1231 = vmatpush1.bf16.msra.mxu0 %v1646_v8  ;;  %1272 = vmatpush1.bf16.msra.mxu1 %v1647_v9 }
 0x764   :  { %v1111_v10 = vpop.f32.mrb[24].mxu0  ;;  %v1152_v11 = vpop.f32.mrb[24].mxu1 }
 0x765   :  { %v1113_v12 = vpop.f32.mrb[25].mxu0  ;;  %v1154_v13 = vpop.f32.mrb[25].mxu1 }
 0x766   :  { %v1163_v14 = vcombine.low %v1111_v10, %v1113_v12  ;;  %v1164_v15 = vcombine.low %v1152_v11, %v1154_v13  ;;  %v1115_v16 = vpop.f32.mrb[26].mxu0  ;;  %v1156_v17 = vpop.f32.mrb[26].mxu1 }
 0x767   :  { %v1116_v18 = vpop.f32.mrb[27].mxu0  ;;  %v1157_v19 = vpop.f32.mrb[27].mxu1 }
 0x768   :  { %v1171_v20 = vrot.slane %v1163_v14, %v1903_v43  ;;  %v1178_v21 = vrot.slane %v1164_v15, %v1903_v43 }
 0x76a   :  { %v1179_v23 = vcombine.low %v1171_v20, %v1178_v21 }
 0x76c   :  { %v1181_v24 = vadd.f32 %v1179_v23, %v1075_v22 }
 0x76e   :  { %v1424_v25 = vmul.f32 -1.442695, %v1181_v24  ;;  %v1189_v26 = vrot.slane %v1181_v24, 2  ;;  %v1200_v28 = vrot.slane %v1181_v24, 6  ;;  %v1197_v31 = vrot.slane %v1181_v24, 4 }
 0x770   :  { %1584 = vpow2.f32 %v1424_v25  ;;  %v1425_v27 = vmul.f32 -1.442695, %v1189_v26  ;;  %v1426_v29 = vmul.f32 -1.442695, %v1200_v28 }
 0x772   :  { %1586 = vpow2.f32 %v1425_v27 }
 0x773   :  { %1588 = vpow2.f32 %v1426_v29 }
 0x77a   :  { %v1585_v30 = vpop.eup %1584 }
 0x77b   :  { %v1185_v32 = vadd.f32 1.0, %v1585_v30 }
 0x77c   :  { %v1587_v33 = vpop.eup %1586 }
 0x77d   :  { %1590 = vrcp.f32 %v1185_v32  ;;  %v1194_v36 = vadd.f32 1.0, %v1587_v33  ;;  %v1589_v48 = vpop.eup %1588 }
 0x77e   :  { %1592 = vtanh.f32 %v1197_v31  ;;  %v1205_v54 = vadd.f32 1.0, %v1589_v48 }
 0x77f   :  { %1594 = vrcp.f32 %v1194_v36 }
 0x780   :  { %1596 = vrcp.f32 %v1205_v54 }
 0x787   :  { %v1591_v49 = vpop.eup %1590 }
 0x788   :  { %v1593_v50 = vpop.eup %1592 }
 0x789   :  { %v1595_v52 = vpop.eup %1594  ;;  %v1209_v56 = vmul.f32 %v1593_v50, %v1591_v49 }
 0x78a   :  { %v1208_v55 = vmul.f32 %v1595_v52, %v2105_v51  ;;  %v1597_v2 = vpop.eup %1596 }
 0x78c   :  { %v1210_v57 = vadd.f32 %v1209_v56, %v1208_v55 }
 0x78e   :  { %1598 = vtanh.f32 %v1210_v57 }
 0x798   :  { %v1599_v45 = vpop.eup %1598 }
 0x799   :  { %v1212_v3 = vmul.f32 %v1599_v45, %v1597_v2 }
 0x79b   :  { %v1215_v58 = vpack.c.bf16 %v1212_v3, %v1212_v3 }
 0x79d   :  { %1249 = vmatmul.mubr.bf16.vlgmr.msra.gmra.mrb[28].mxu0 %v1215_v58  ;;  %1290 = vmatmul.mubr.bf16.vlgmr.msra.gmra.mrb[28].mxu1 %v1215_v58 }
 0x870   :  { %v1250_v59 = vpop.f32.mrb[28].mxu0  ;;  %v1291_v61 = vpop.f32.mrb[28].mxu1 }
 0x871   :  { %v1252_v62 = vpop.f32.mrb[29].mxu0  ;;  %v1293_v63 = vpop.f32.mrb[29].mxu1 }
 0x872   :  { %v1302_v1 = vcombine.low %v1250_v59, %v1252_v62  ;;  %v1303_v53 = vcombine.low %v1291_v61, %v1293_v63  ;;  %v1254_v34 = vpop.f32.mrb[30].mxu0  ;;  %v1295_v35 = vpop.f32.mrb[30].mxu1 }
 0x873   :  { %v1255_v37 = vpop.f32.mrb[31].mxu0  ;;  %v1296_v51 = vpop.f32.mrb[31].mxu1 }
 0x874   :  { %v1310_v0 = vrot.slane %v1302_v1, %v1903_v43  ;;  %v1317_v38 = vrot.slane %v1303_v53, %v1903_v43 }
 0x876   :  { %v1318_v40 = vcombine.low %v1310_v0, %v1317_v38 }
 0x878   :  { %v1320_v60 = vadd.f32 %v1318_v40, %v1214_v39 }
 0x87a   :  { %v1427_v41 = vmul.f32 -1.442695, %v1320_v60  ;;  %v1328_v42 = vrot.slane %v1320_v60, 2  ;;  %v1339_v46 = vrot.slane %v1320_v60, 6  ;;  %v1336_v5 = vrot.slane %v1320_v60, 4 }
 0x87c   :  { %1600 = vpow2.f32 %v1427_v41  ;;  %v1428_v44 = vmul.f32 -1.442695, %v1328_v42  ;;  %v1429_v47 = vmul.f32 -1.442695, %v1339_v46 }
 0x87e   :  { %1602 = vpow2.f32 %v1428_v44 }
 0x87f   :  { %1604 = vpow2.f32 %v1429_v47 }
 0x886   :  { %v1601_v4 = vpop.eup %1600 }
 0x887   :  { %v1324_v6 = vadd.f32 1.0, %v1601_v4 }
 0x888   :  { %v1603_v7 = vpop.eup %1602 }
 0x889   :  { %1606 = vrcp.f32 %v1324_v6  ;;  %v1333_v8 = vadd.f32 1.0, %v1603_v7  ;;  %v1605_v43 = vpop.eup %1604 }
 0x88a   :  { %1608 = vtanh.f32 %v1336_v5  ;;  %v1344_v12 = vadd.f32 1.0, %v1605_v43 }
 0x88b   :  { %1610 = vrcp.f32 %v1333_v8 }
 0x88c   :  { %1612 = vrcp.f32 %v1344_v12 }
 0x893   :  { %v1607_v9 = vpop.eup %1606 }
 0x894   :  { %v1609_v10 = vpop.eup %1608 }
 0x895   :  { %v1611_v11 = vpop.eup %1610  ;;  %v1348_v14 = vmul.f32 %v1609_v10, %v1607_v9 }
 0x896   :  { %v1347_v13 = vmul.f32 %v1611_v11, %v1210_v57  ;;  %v1613_v16 = vpop.eup %1612 }
 0x898   :  { %v1349_v15 = vadd.f32 %v1348_v14, %v1347_v13 }
 0x89a   :  { %1614 = vtanh.f32 %v1349_v15  ;;  %1353 = vst [vmem:[#allocation3] sm:$0x3] %v1349_v15 }
 0x8a4   :  { %v1615_v17 = vpop.eup %1614 }
 0x8a5   :  { %v1351_v18 = vmul.f32 %v1615_v17, %v1613_v16 }
 0x8a7   :  { %1352 = vst [vmem:[#allocation2] sm:$0x3] %v1351_v18  ;;  %1357 = vst [vmem:[#allocation9] sm:$0x3] %v1351_v18 }
 0x8a8   :  { %1703 = shalt.err (!%p1700_p6)
}
 0x8a9   :  { %s1704_s12 = scalar_lea.hbm %s2129_s2, 32 }
 0x8aa   :  { %p1705_p7 = scmp.ne.s32.totalorder %s2129_s2, %s1704_s12  ;;  %p1708_p8 = scmp.lt.u32.totalorder %s1704_s12, %s2129_s2 }
 0x8ac   :  { %p1710_p9 = pnand %p1708_p8, %p1705_p7 }
 0x8ae   :  { %1713 = shalt.err (!%p1710_p9)
}
 0x8af   :  { %1367 = dma.vmem_to_hbm [thread:$0]  %s1365_s8, 32, %s2129_s2, [#allocation6]  }
 0x8b0   :  { %1718 = dma.done.wait [#allocation6], 32  }
 0x8b1   :  { %1719 = vsyncadd [#allocation6], 4294967264 }
 0x8b2   :  { %1371 = vsyncpa [#allocation5], 1 }
 0x8b3   :  { %1372 = vsyncpa [#allocation8], 1 }
 0x8b4   :  { %1373 = vsyncpa [#allocation6], 1 }

</bundles_post_ra>
